<compile_context>
chip_gen: v7x
topology: tpu7x:2x2x1
jax: 0.10.0
libtpu: 0.0.40
codegen_flags: <defaults>
</compile_context>

<pallas_src>
import functools
import math

import jax
import jax.numpy as jnp
from jax.experimental import pallas as pl
from jax.experimental.pallas import tpu as pltpu


# ----------------------------------------------------------------------------
# Fused EncoderLayer kernel (runs once; no grid)
# ----------------------------------------------------------------------------
def _encoder_layer_kernel(
    x_ref,      # (B*L, D)   f32   input rows (batch folded into rows)
    wqkv_ref,   # (D, 3*D)   bf16  [wq*scale | wk | wv], heads packed along lanes
    wo_ref,     # (D, D)     bf16  out-projection
    w1_ref,     # (D, d_ff)  bf16  conv1 (k=1) as matmul
    w2_ref,     # (d_ff, D)  bf16  conv2 (k=1) as matmul
    vec_ref,    # (8, d_ff)  f32   packed vectors: rows = bo,g1,be1,b2,g2,be2,b1,0
    out_ref,    # (L, B*D + B*H*L) f32   [ y_wide | attn_wide ]  lane-dense
    *, B, L, n_heads, d_head, eps,
):
    D = n_heads * d_head

    x = x_ref[...]                              # (B*L, D) f32 (full precision)
    x_bf = x.astype(jnp.bfloat16)               # bf16 only as MXU operand

    # -- packed small vectors: one (8, d_ff) f32 tile, static row/col slices --
    bo  = vec_ref[0:1, :D]
    g1  = vec_ref[1:2, :D]
    be1 = vec_ref[2:3, :D]
    b2  = vec_ref[3:4, :D]
    g2  = vec_ref[4:5, :D]
    be2 = vec_ref[5:6, :D]
    b1  = vec_ref[6:7, :]                       # (1, d_ff)

    # ---- fused QKV projection for all batches & heads: one MXU matmul ----
    # softmax scale is already folded into the Q columns of wqkv.
    qkv = jnp.dot(x_bf, wqkv_ref[...],
                  preferred_element_type=jnp.float32)        # (B*L, 3D) f32

    # ---- per-(batch, head) softmax attention, statically unrolled ----
    # Head concat is folded into the out-projection (ctx_h @ wo_rows_h), so
    # no lane concatenate of contexts is needed.
    attn_parts = []                              # B*H blocks of (L, L) f32
    new_x_rows = []                              # B blocks of (L, D) f32
    for b in range(B):
        r0 = b * L
        acc = None
        for h in range(n_heads):
            c0 = h * d_head
            qh = qkv[r0:r0 + L, c0:c0 + d_head]                  # (L, dh)
            kh = qkv[r0:r0 + L, D + c0:D + c0 + d_head]
            vh = qkv[r0:r0 + L, 2 * D + c0:2 * D + c0 + d_head]

            # scores = qh @ kh^T (no explicit transpose); scale pre-folded
            s = jax.lax.dot_general(
                qh, kh, (((1,), (1,)), ((), ())),
                preferred_element_type=jnp.float32)              # (L, L)
            s = s - jnp.max(s, axis=-1, keepdims=True)
            e = jnp.exp(s)
            # exact divide: attn is an output (output_attention=True)
            p = e / jnp.sum(e, axis=-1, keepdims=True)
            attn_parts.append(p)

            ctx = jnp.dot(p.astype(jnp.bfloat16), vh.astype(jnp.bfloat16),
                          preferred_element_type=jnp.float32)    # (L, dh)
            contrib = jnp.dot(ctx.astype(jnp.bfloat16),
                              wo_ref[c0:c0 + d_head, :],
                              preferred_element_type=jnp.float32)  # (L, D)
            acc = contrib if acc is None else acc + contrib
        new_x_rows.append(acc)

    new_x = jnp.concatenate(new_x_rows, axis=0) + bo             # (B*L, D)
    xr = x + new_x                                               # x = x + new_x

    # ---- LayerNorm1 (channel dim, f32 statistics) ----
    mu = jnp.mean(xr, axis=-1, keepdims=True)
    var = jnp.mean((xr - mu) ** 2, axis=-1, keepdims=True)
    xn = (xr - mu) * jax.lax.rsqrt(var + eps) * g1 + be1

    # ---- conv1 (k=1) + ReLU ; conv2 (k=1) + ReLU (as in the module) ----
    h1 = jnp.dot(xn.astype(jnp.bfloat16), w1_ref[...],
                 preferred_element_type=jnp.float32) + b1
    h1 = jnp.maximum(h1, 0.0)
    y = jnp.dot(h1.astype(jnp.bfloat16), w2_ref[...],
                preferred_element_type=jnp.float32) + b2
    y = jnp.maximum(y, 0.0)

    # ---- second residual (against LayerNorm1 output) + LayerNorm2 ----
    z = xn + y
    mu2 = jnp.mean(z, axis=-1, keepdims=True)
    var2 = jnp.mean((z - mu2) ** 2, axis=-1, keepdims=True)
    zn = (z - mu2) * jax.lax.rsqrt(var2 + eps) * g2 + be2        # (B*L, D)

    # ---- single lane-dense store: [ y for b=0..B-1 | attn for (b,h)... ] ----
    # (L, B*D + B*H*L) = (8, 128): one full f32 tile, one unmasked vst.
    y_parts = [zn[b * L:(b + 1) * L, :] for b in range(B)]       # B x (L, D)
    out_ref[...] = jnp.concatenate(y_parts + attn_parts, axis=-1)


# ----------------------------------------------------------------------------
# Wrapper
# ----------------------------------------------------------------------------
def encoder_layer_pallas(x, params, n_heads, eps=1e-5):
    """x: (B, L, D) f32 -> (y: (B, L, D) f32, attn: (B, H, L, L) f32)."""
    B, L, D = x.shape
    H = n_heads
    dh = D // H
    d_ff = params["w1"].shape[-1]
    assert H * dh == D and params["wqkv"].shape == (D, 3 * D)
    out_w = B * D + B * H * L        # 64 + 64 = 128 at the toy config

    kernel = functools.partial(
        _encoder_layer_kernel, B=B, L=L, n_heads=H, d_head=dh, eps=eps)

    out = pl.pallas_call(
        kernel,
        out_shape=jax.ShapeDtypeStruct((L, out_w), jnp.float32),
        compiler_params=pltpu.CompilerParams(),
    )(
        x.reshape(B * L, D).astype(jnp.float32),   # keep f32; bf16 only in-kernel
        params["wqkv"], params["wo"], params["w1"], params["w2"], params["vecs"],
    )

    # Wrapper-side layout plumbing (free in XLA):
    y_wide = out[:, :B * D]                         # (L, B*D)
    attn_wide = out[:, B * D:]                      # (L, B*H*L)
    y = y_wide.reshape(L, B, D).transpose(1, 0, 2)                  # (B, L, D)
    attn = attn_wide.reshape(L, B, H, L).transpose(1, 2, 0, 3)      # (B, H, L, L)
    return y, attn


@functools.partial(jax.jit, static_argnames=("n_heads",))
def encoder_layer_forward(x, params, n_heads):
    return encoder_layer_pallas(x, params, n_heads)


# ----------------------------------------------------------------------------
# Parameter construction (deterministic, synthetic)
# ----------------------------------------------------------------------------
def init_params(key, d_model, n_heads, d_ff):
    assert d_ff >= d_model
    dh = d_model // n_heads
    ks = jax.random.split(key, 6)
    s = 0.1
    # Q/K/V for all heads packed into one lane-dense matrix [wq | wk | wv];
    # head h occupies columns [h*dh, (h+1)*dh) of its section. The softmax
    # scale 1/sqrt(dh) is folded into the Q columns (static weight fold).
    wqkv = s * jax.random.normal(ks[0], (d_model, 3 * d_model), jnp.float32)
    wqkv = wqkv.at[:, :d_model].multiply(1.0 / math.sqrt(dh))
    wo = s * jax.random.normal(ks[1], (d_model, d_model), jnp.float32)
    bo = s * jax.random.normal(ks[2], (d_model,), jnp.float32)
    # conv1: torch (d_ff, d_model, 1) -> stored (d_model, d_ff); conv2 likewise.
    w1 = s * jax.random.normal(ks[3], (d_model, d_ff), jnp.float32)
    b1 = s * jax.random.normal(ks[4], (d_ff,), jnp.float32)
    w2 = s * jax.random.normal(ks[5], (d_ff, d_model), jnp.float32)
    b2 = jnp.zeros((d_model,), jnp.float32)
    ln1_g = jnp.ones((d_model,), jnp.float32)
    ln1_b = jnp.zeros((d_model,), jnp.float32)
    ln2_g = jnp.ones((d_model,), jnp.float32)
    ln2_b = jnp.zeros((d_model,), jnp.float32)

    # Pack all small f32 vectors into ONE (8, d_ff) slab = one f32 tile / one DMA.
    vecs = jnp.zeros((8, d_ff), jnp.float32)
    vecs = vecs.at[0, :d_model].set(bo)
    vecs = vecs.at[1, :d_model].set(ln1_g)
    vecs = vecs.at[2, :d_model].set(ln1_b)
    vecs = vecs.at[3, :d_model].set(b2)
    vecs = vecs.at[4, :d_model].set(ln2_g)
    vecs = vecs.at[5, :d_model].set(ln2_b)
    vecs = vecs.at[6, :].set(b1)

    return {
        "wqkv": wqkv.astype(jnp.bfloat16),
        "wo": wo.astype(jnp.bfloat16),
        "w1": w1.astype(jnp.bfloat16),
        "w2": w2.astype(jnp.bfloat16),
        "vecs": vecs,
    }


# ----------------------------------------------------------------------------
# Pure-JAX reference mirroring the kernel's numerics (bf16 matmul operands,
# f32 accumulation) for a sanity check.
# ----------------------------------------------------------------------------
def _reference_forward(x, params, n_heads, eps=1e-5):
    B, L, D = x.shape
    dh = D // n_heads
    f32 = lambda a: a.astype(jnp.float32)
    bfr = lambda a: a.astype(jnp.bfloat16).astype(jnp.float32)  # bf16 rounding
    wqkv, wo = f32(params["wqkv"]), f32(params["wo"])
    w1, w2 = f32(params["w1"]), f32(params["w2"])
    v = params["vecs"]
    bo, g1, be1, b2, g2, be2 = (v[i, :D] for i in range(6))
    b1 = v[6, :]

    qkv = jnp.einsum("bld,de->ble", bfr(x), wqkv)
    q, k, val = qkv[..., :D], qkv[..., D:2 * D], qkv[..., 2 * D:]
    qh = q.reshape(B, L, n_heads, dh).transpose(0, 2, 1, 3)
    kh = k.reshape(B, L, n_heads, dh).transpose(0, 2, 1, 3)
    vh = val.reshape(B, L, n_heads, dh).transpose(0, 2, 1, 3)
    s = jnp.einsum("bhld,bhmd->bhlm", qh, kh)      # scale folded into wqkv
    p = jax.nn.softmax(s, axis=-1)
    ctx = jnp.einsum("bhlm,bhmd->bhld", bfr(p), bfr(vh))
    ctx = ctx.transpose(0, 2, 1, 3).reshape(B, L, D)
    new_x = jnp.einsum("bld,de->ble", bfr(ctx), wo) + bo
    xr = x + new_x
    mu = xr.mean(-1, keepdims=True)
    var = ((xr - mu) ** 2).mean(-1, keepdims=True)
    xn = (xr - mu) * jax.lax.rsqrt(var + eps) * g1 + be1
    h1 = jnp.maximum(jnp.einsum("bld,df->blf", bfr(xn), w1) + b1, 0.0)
    y = jnp.maximum(jnp.einsum("blf,fd->bld", bfr(h1), w2) + b2, 0.0)
    z = xn + y
    mu2 = z.mean(-1, keepdims=True)
    var2 = ((z - mu2) ** 2).mean(-1, keepdims=True)
    out = (z - mu2) * jax.lax.rsqrt(var2 + eps) * g2 + be2
    return out, p


if __name__ == "__main__":
    # Single attention type ('Full'), d_model=32, n_heads=4 -> head dim 8,
    # d_ff = d_model * 2 = 64, forward_kernel_size=1, output_attention=True.
    B, L, d_model, n_heads = 2, 8, 32, 4
    d_ff = d_model * 2

    key = jax.random.PRNGKey(0)
    kx, kp = jax.random.split(key)
    x = jax.random.normal(kx, (B, L, d_model), jnp.float32)
    params = init_params(kp, d_model, n_heads, d_ff)

    y, attn = encoder_layer_forward(x, params, n_heads=n_heads)
    jax.block_until_ready((y, attn))

    assert y.shape == (B, L, d_model)
    assert attn.shape == (B, n_heads, L, L)
    assert bool(jnp.all(jnp.isfinite(y)))
    assert bool(jnp.all(jnp.isfinite(attn)))
    # attention rows sum to 1 (exact softmax divide in-kernel)
    assert bool(jnp.all(jnp.abs(jnp.sum(attn, axis=-1) - 1.0) < 1e-3))

    # sanity check vs pure-JAX reference with matching precision strategy
    y_ref, attn_ref = _reference_forward(x, params, n_heads)
    assert bool(jnp.allclose(y, y_ref, atol=2e-2, rtol=2e-2))
    assert bool(jnp.allclose(attn, attn_ref, atol=2e-2, rtol=2e-2))

    print("KERNEL_OK")
</pallas_src>

<mosaic_0001>
module attributes {stable_mosaic.version = 11 : i64} {
  func.func @_encoder_layer_kernel(%arg0: memref<16x32xf32, #tpu.memory_space<vmem>>, %arg1: memref<32x96xbf16, #tpu.memory_space<vmem>>, %arg2: memref<32x32xbf16, #tpu.memory_space<vmem>>, %arg3: memref<32x64xbf16, #tpu.memory_space<vmem>>, %arg4: memref<64x32xbf16, #tpu.memory_space<vmem>>, %arg5: memref<8x64xf32, #tpu.memory_space<vmem>>, %arg6: memref<8x128xf32, #tpu.memory_space<vmem>>) attributes {dimension_semantics = [], scalar_prefetch = 0 : i64, scratch_operands = 0 : i64, tpu.core_type = #tpu.core_type<tc>} {
    %c0 = arith.constant 0 : index
    %c0_0 = arith.constant 0 : index
    %0 = vector.load %arg0[%c0, %c0_0] : memref<16x32xf32, #tpu.memory_space<vmem>>, vector<16x32xf32>
    %1 = arith.truncf %0 : vector<16x32xf32> to vector<16x32xbf16>
    %c0_1 = arith.constant 0 : index
    %c0_2 = arith.constant 0 : index
    %2 = vector.load %arg5[%c0_1, %c0_2] : memref<8x64xf32, #tpu.memory_space<vmem>>, vector<1x32xf32>
    %c1 = arith.constant 1 : index
    %c0_3 = arith.constant 0 : index
    %3 = vector.load %arg5[%c1, %c0_3] : memref<8x64xf32, #tpu.memory_space<vmem>>, vector<1x32xf32>
    %c2 = arith.constant 2 : index
    %c0_4 = arith.constant 0 : index
    %4 = vector.load %arg5[%c2, %c0_4] : memref<8x64xf32, #tpu.memory_space<vmem>>, vector<1x32xf32>
    %c3 = arith.constant 3 : index
    %c0_5 = arith.constant 0 : index
    %5 = vector.load %arg5[%c3, %c0_5] : memref<8x64xf32, #tpu.memory_space<vmem>>, vector<1x32xf32>
    %c4 = arith.constant 4 : index
    %c0_6 = arith.constant 0 : index
    %6 = vector.load %arg5[%c4, %c0_6] : memref<8x64xf32, #tpu.memory_space<vmem>>, vector<1x32xf32>
    %c5 = arith.constant 5 : index
    %c0_7 = arith.constant 0 : index
    %7 = vector.load %arg5[%c5, %c0_7] : memref<8x64xf32, #tpu.memory_space<vmem>>, vector<1x32xf32>
    %c6 = arith.constant 6 : index
    %c0_8 = arith.constant 0 : index
    %8 = vector.load %arg5[%c6, %c0_8] : memref<8x64xf32, #tpu.memory_space<vmem>>, vector<1x64xf32>
    %c0_9 = arith.constant 0 : index
    %c0_10 = arith.constant 0 : index
    %9 = vector.load %arg1[%c0_9, %c0_10] : memref<32x96xbf16, #tpu.memory_space<vmem>>, vector<32x96xbf16>
    %cst = arith.constant dense<0.000000e+00> : vector<16x96xf32>
    %10 = tpu.matmul %1, %9, %cst {dimension_numbers = #tpu.dot_dimension_numbers<[1], [0], [0], [1], [0, 0, 1, 1], [], []>} : vector<16x32xbf16>, vector<32x96xbf16>, vector<16x96xf32> -> vector<16x96xf32>
    %11 = vector.extract_strided_slice %10 {offsets = [0, 0], sizes = [8, 8], strides = [1, 1]} : vector<16x96xf32> to vector<8x8xf32>
    %12 = vector.extract_strided_slice %10 {offsets = [0, 32], sizes = [8, 8], strides = [1, 1]} : vector<16x96xf32> to vector<8x8xf32>
    %13 = vector.extract_strided_slice %10 {offsets = [0, 64], sizes = [8, 8], strides = [1, 1]} : vector<16x96xf32> to vector<8x8xf32>
    %cst_11 = arith.constant dense<0.000000e+00> : vector<8x8xf32>
    %14 = tpu.matmul %11, %12, %cst_11 {dimension_numbers = #tpu.dot_dimension_numbers<[1], [1], [0], [0], [0, 0, 1, 0], [], []>} : vector<8x8xf32>, vector<8x8xf32>, vector<8x8xf32> -> vector<8x8xf32>
    %cst_12 = arith.constant dense<0xFF800000> : vector<8xf32>
    %15 = vector.multi_reduction <maximumf>, %14, %cst_12 [1] : vector<8x8xf32> to vector<8xf32>
    %16 = vector.shape_cast %15 : vector<8xf32> to vector<8x1xf32>
    %17 = vector.broadcast %16 : vector<8x1xf32> to vector<8x8xf32>
    %18 = arith.subf %14, %17 : vector<8x8xf32>
    %19 = math.exp %18 : vector<8x8xf32>
    %cst_13 = arith.constant dense<0.000000e+00> : vector<8xf32>
    %20 = vector.multi_reduction <add>, %19, %cst_13 [1] : vector<8x8xf32> to vector<8xf32>
    %21 = vector.shape_cast %20 : vector<8xf32> to vector<8x1xf32>
    %22 = vector.broadcast %21 : vector<8x1xf32> to vector<8x8xf32>
    %23 = arith.divf %19, %22 : vector<8x8xf32>
    %24 = arith.truncf %23 : vector<8x8xf32> to vector<8x8xbf16>
    %25 = arith.truncf %13 : vector<8x8xf32> to vector<8x8xbf16>
    %cst_14 = arith.constant dense<0.000000e+00> : vector<8x8xf32>
    %26 = tpu.matmul %24, %25, %cst_14 {dimension_numbers = #tpu.dot_dimension_numbers<[1], [0], [0], [1], [0, 0, 1, 1], [], []>} : vector<8x8xbf16>, vector<8x8xbf16>, vector<8x8xf32> -> vector<8x8xf32>
    %27 = arith.truncf %26 : vector<8x8xf32> to vector<8x8xbf16>
    %c0_15 = arith.constant 0 : index
    %c0_16 = arith.constant 0 : index
    %28 = vector.load %arg2[%c0_15, %c0_16] : memref<32x32xbf16, #tpu.memory_space<vmem>>, vector<8x32xbf16>
    %cst_17 = arith.constant dense<0.000000e+00> : vector<8x32xf32>
    %29 = tpu.matmul %27, %28, %cst_17 {dimension_numbers = #tpu.dot_dimension_numbers<[1], [0], [0], [1], [0, 0, 1, 1], [], []>} : vector<8x8xbf16>, vector<8x32xbf16>, vector<8x32xf32> -> vector<8x32xf32>
    %30 = vector.extract_strided_slice %10 {offsets = [0, 8], sizes = [8, 8], strides = [1, 1]} : vector<16x96xf32> to vector<8x8xf32>
    %31 = vector.extract_strided_slice %10 {offsets = [0, 40], sizes = [8, 8], strides = [1, 1]} : vector<16x96xf32> to vector<8x8xf32>
    %32 = vector.extract_strided_slice %10 {offsets = [0, 72], sizes = [8, 8], strides = [1, 1]} : vector<16x96xf32> to vector<8x8xf32>
    %cst_18 = arith.constant dense<0.000000e+00> : vector<8x8xf32>
    %33 = tpu.matmul %30, %31, %cst_18 {dimension_numbers = #tpu.dot_dimension_numbers<[1], [1], [0], [0], [0, 0, 1, 0], [], []>} : vector<8x8xf32>, vector<8x8xf32>, vector<8x8xf32> -> vector<8x8xf32>
    %cst_19 = arith.constant dense<0xFF800000> : vector<8xf32>
    %34 = vector.multi_reduction <maximumf>, %33, %cst_19 [1] : vector<8x8xf32> to vector<8xf32>
    %35 = vector.shape_cast %34 : vector<8xf32> to vector<8x1xf32>
    %36 = vector.broadcast %35 : vector<8x1xf32> to vector<8x8xf32>
    %37 = arith.subf %33, %36 : vector<8x8xf32>
    %38 = math.exp %37 : vector<8x8xf32>
    %cst_20 = arith.constant dense<0.000000e+00> : vector<8xf32>
    %39 = vector.multi_reduction <add>, %38, %cst_20 [1] : vector<8x8xf32> to vector<8xf32>
    %40 = vector.shape_cast %39 : vector<8xf32> to vector<8x1xf32>
    %41 = vector.broadcast %40 : vector<8x1xf32> to vector<8x8xf32>
    %42 = arith.divf %38, %41 : vector<8x8xf32>
    %43 = arith.truncf %42 : vector<8x8xf32> to vector<8x8xbf16>
    %44 = arith.truncf %32 : vector<8x8xf32> to vector<8x8xbf16>
    %cst_21 = arith.constant dense<0.000000e+00> : vector<8x8xf32>
    %45 = tpu.matmul %43, %44, %cst_21 {dimension_numbers = #tpu.dot_dimension_numbers<[1], [0], [0], [1], [0, 0, 1, 1], [], []>} : vector<8x8xbf16>, vector<8x8xbf16>, vector<8x8xf32> -> vector<8x8xf32>
    %46 = arith.truncf %45 : vector<8x8xf32> to vector<8x8xbf16>
    %c8 = arith.constant 8 : index
    %c0_22 = arith.constant 0 : index
    %47 = vector.load %arg2[%c8, %c0_22] : memref<32x32xbf16, #tpu.memory_space<vmem>>, vector<8x32xbf16>
    %cst_23 = arith.constant dense<0.000000e+00> : vector<8x32xf32>
    %48 = tpu.matmul %46, %47, %cst_23 {dimension_numbers = #tpu.dot_dimension_numbers<[1], [0], [0], [1], [0, 0, 1, 1], [], []>} : vector<8x8xbf16>, vector<8x32xbf16>, vector<8x32xf32> -> vector<8x32xf32>
    %49 = arith.addf %29, %48 : vector<8x32xf32>
    %50 = vector.extract_strided_slice %10 {offsets = [0, 16], sizes = [8, 8], strides = [1, 1]} : vector<16x96xf32> to vector<8x8xf32>
    %51 = vector.extract_strided_slice %10 {offsets = [0, 48], sizes = [8, 8], strides = [1, 1]} : vector<16x96xf32> to vector<8x8xf32>
    %52 = vector.extract_strided_slice %10 {offsets = [0, 80], sizes = [8, 8], strides = [1, 1]} : vector<16x96xf32> to vector<8x8xf32>
    %cst_24 = arith.constant dense<0.000000e+00> : vector<8x8xf32>
    %53 = tpu.matmul %50, %51, %cst_24 {dimension_numbers = #tpu.dot_dimension_numbers<[1], [1], [0], [0], [0, 0, 1, 0], [], []>} : vector<8x8xf32>, vector<8x8xf32>, vector<8x8xf32> -> vector<8x8xf32>
    %cst_25 = arith.constant dense<0xFF800000> : vector<8xf32>
    %54 = vector.multi_reduction <maximumf>, %53, %cst_25 [1] : vector<8x8xf32> to vector<8xf32>
    %55 = vector.shape_cast %54 : vector<8xf32> to vector<8x1xf32>
    %56 = vector.broadcast %55 : vector<8x1xf32> to vector<8x8xf32>
    %57 = arith.subf %53, %56 : vector<8x8xf32>
    %58 = math.exp %57 : vector<8x8xf32>
    %cst_26 = arith.constant dense<0.000000e+00> : vector<8xf32>
    %59 = vector.multi_reduction <add>, %58, %cst_26 [1] : vector<8x8xf32> to vector<8xf32>
    %60 = vector.shape_cast %59 : vector<8xf32> to vector<8x1xf32>
    %61 = vector.broadcast %60 : vector<8x1xf32> to vector<8x8xf32>
    %62 = arith.divf %58, %61 : vector<8x8xf32>
    %63 = arith.truncf %62 : vector<8x8xf32> to vector<8x8xbf16>
    %64 = arith.truncf %52 : vector<8x8xf32> to vector<8x8xbf16>
    %cst_27 = arith.constant dense<0.000000e+00> : vector<8x8xf32>
    %65 = tpu.matmul %63, %64, %cst_27 {dimension_numbers = #tpu.dot_dimension_numbers<[1], [0], [0], [1], [0, 0, 1, 1], [], []>} : vector<8x8xbf16>, vector<8x8xbf16>, vector<8x8xf32> -> vector<8x8xf32>
    %66 = arith.truncf %65 : vector<8x8xf32> to vector<8x8xbf16>
    %c16 = arith.constant 16 : index
    %c0_28 = arith.constant 0 : index
    %67 = vector.load %arg2[%c16, %c0_28] : memref<32x32xbf16, #tpu.memory_space<vmem>>, vector<8x32xbf16>
    %cst_29 = arith.constant dense<0.000000e+00> : vector<8x32xf32>
    %68 = tpu.matmul %66, %67, %cst_29 {dimension_numbers = #tpu.dot_dimension_numbers<[1], [0], [0], [1], [0, 0, 1, 1], [], []>} : vector<8x8xbf16>, vector<8x32xbf16>, vector<8x32xf32> -> vector<8x32xf32>
    %69 = arith.addf %49, %68 : vector<8x32xf32>
    %70 = vector.extract_strided_slice %10 {offsets = [0, 24], sizes = [8, 8], strides = [1, 1]} : vector<16x96xf32> to vector<8x8xf32>
    %71 = vector.extract_strided_slice %10 {offsets = [0, 56], sizes = [8, 8], strides = [1, 1]} : vector<16x96xf32> to vector<8x8xf32>
    %72 = vector.extract_strided_slice %10 {offsets = [0, 88], sizes = [8, 8], strides = [1, 1]} : vector<16x96xf32> to vector<8x8xf32>
    %cst_30 = arith.constant dense<0.000000e+00> : vector<8x8xf32>
    %73 = tpu.matmul %70, %71, %cst_30 {dimension_numbers = #tpu.dot_dimension_numbers<[1], [1], [0], [0], [0, 0, 1, 0], [], []>} : vector<8x8xf32>, vector<8x8xf32>, vector<8x8xf32> -> vector<8x8xf32>
    %cst_31 = arith.constant dense<0xFF800000> : vector<8xf32>
    %74 = vector.multi_reduction <maximumf>, %73, %cst_31 [1] : vector<8x8xf32> to vector<8xf32>
    %75 = vector.shape_cast %74 : vector<8xf32> to vector<8x1xf32>
    %76 = vector.broadcast %75 : vector<8x1xf32> to vector<8x8xf32>
    %77 = arith.subf %73, %76 : vector<8x8xf32>
    %78 = math.exp %77 : vector<8x8xf32>
    %cst_32 = arith.constant dense<0.000000e+00> : vector<8xf32>
    %79 = vector.multi_reduction <add>, %78, %cst_32 [1] : vector<8x8xf32> to vector<8xf32>
    %80 = vector.shape_cast %79 : vector<8xf32> to vector<8x1xf32>
    %81 = vector.broadcast %80 : vector<8x1xf32> to vector<8x8xf32>
    %82 = arith.divf %78, %81 : vector<8x8xf32>
    %83 = arith.truncf %82 : vector<8x8xf32> to vector<8x8xbf16>
    %84 = arith.truncf %72 : vector<8x8xf32> to vector<8x8xbf16>
    %cst_33 = arith.constant dense<0.000000e+00> : vector<8x8xf32>
    %85 = tpu.matmul %83, %84, %cst_33 {dimension_numbers = #tpu.dot_dimension_numbers<[1], [0], [0], [1], [0, 0, 1, 1], [], []>} : vector<8x8xbf16>, vector<8x8xbf16>, vector<8x8xf32> -> vector<8x8xf32>
    %86 = arith.truncf %85 : vector<8x8xf32> to vector<8x8xbf16>
    %c24 = arith.constant 24 : index
    %c0_34 = arith.constant 0 : index
    %87 = vector.load %arg2[%c24, %c0_34] : memref<32x32xbf16, #tpu.memory_space<vmem>>, vector<8x32xbf16>
    %cst_35 = arith.constant dense<0.000000e+00> : vector<8x32xf32>
    %88 = tpu.matmul %86, %87, %cst_35 {dimension_numbers = #tpu.dot_dimension_numbers<[1], [0], [0], [1], [0, 0, 1, 1], [], []>} : vector<8x8xbf16>, vector<8x32xbf16>, vector<8x32xf32> -> vector<8x32xf32>
    %89 = arith.addf %69, %88 : vector<8x32xf32>
    %90 = vector.extract_strided_slice %10 {offsets = [8, 0], sizes = [8, 8], strides = [1, 1]} : vector<16x96xf32> to vector<8x8xf32>
    %91 = vector.extract_strided_slice %10 {offsets = [8, 32], sizes = [8, 8], strides = [1, 1]} : vector<16x96xf32> to vector<8x8xf32>
    %92 = vector.extract_strided_slice %10 {offsets = [8, 64], sizes = [8, 8], strides = [1, 1]} : vector<16x96xf32> to vector<8x8xf32>
    %cst_36 = arith.constant dense<0.000000e+00> : vector<8x8xf32>
    %93 = tpu.matmul %90, %91, %cst_36 {dimension_numbers = #tpu.dot_dimension_numbers<[1], [1], [0], [0], [0, 0, 1, 0], [], []>} : vector<8x8xf32>, vector<8x8xf32>, vector<8x8xf32> -> vector<8x8xf32>
    %cst_37 = arith.constant dense<0xFF800000> : vector<8xf32>
    %94 = vector.multi_reduction <maximumf>, %93, %cst_37 [1] : vector<8x8xf32> to vector<8xf32>
    %95 = vector.shape_cast %94 : vector<8xf32> to vector<8x1xf32>
    %96 = vector.broadcast %95 : vector<8x1xf32> to vector<8x8xf32>
    %97 = arith.subf %93, %96 : vector<8x8xf32>
    %98 = math.exp %97 : vector<8x8xf32>
    %cst_38 = arith.constant dense<0.000000e+00> : vector<8xf32>
    %99 = vector.multi_reduction <add>, %98, %cst_38 [1] : vector<8x8xf32> to vector<8xf32>
    %100 = vector.shape_cast %99 : vector<8xf32> to vector<8x1xf32>
    %101 = vector.broadcast %100 : vector<8x1xf32> to vector<8x8xf32>
    %102 = arith.divf %98, %101 : vector<8x8xf32>
    %103 = arith.truncf %102 : vector<8x8xf32> to vector<8x8xbf16>
    %104 = arith.truncf %92 : vector<8x8xf32> to vector<8x8xbf16>
    %cst_39 = arith.constant dense<0.000000e+00> : vector<8x8xf32>
    %105 = tpu.matmul %103, %104, %cst_39 {dimension_numbers = #tpu.dot_dimension_numbers<[1], [0], [0], [1], [0, 0, 1, 1], [], []>} : vector<8x8xbf16>, vector<8x8xbf16>, vector<8x8xf32> -> vector<8x8xf32>
    %106 = arith.truncf %105 : vector<8x8xf32> to vector<8x8xbf16>
    %c0_40 = arith.constant 0 : index
    %c0_41 = arith.constant 0 : index
    %107 = vector.load %arg2[%c0_40, %c0_41] : memref<32x32xbf16, #tpu.memory_space<vmem>>, vector<8x32xbf16>
    %cst_42 = arith.constant dense<0.000000e+00> : vector<8x32xf32>
    %108 = tpu.matmul %106, %107, %cst_42 {dimension_numbers = #tpu.dot_dimension_numbers<[1], [0], [0], [1], [0, 0, 1, 1], [], []>} : vector<8x8xbf16>, vector<8x32xbf16>, vector<8x32xf32> -> vector<8x32xf32>
    %109 = vector.extract_strided_slice %10 {offsets = [8, 8], sizes = [8, 8], strides = [1, 1]} : vector<16x96xf32> to vector<8x8xf32>
    %110 = vector.extract_strided_slice %10 {offsets = [8, 40], sizes = [8, 8], strides = [1, 1]} : vector<16x96xf32> to vector<8x8xf32>
    %111 = vector.extract_strided_slice %10 {offsets = [8, 72], sizes = [8, 8], strides = [1, 1]} : vector<16x96xf32> to vector<8x8xf32>
    %cst_43 = arith.constant dense<0.000000e+00> : vector<8x8xf32>
    %112 = tpu.matmul %109, %110, %cst_43 {dimension_numbers = #tpu.dot_dimension_numbers<[1], [1], [0], [0], [0, 0, 1, 0], [], []>} : vector<8x8xf32>, vector<8x8xf32>, vector<8x8xf32> -> vector<8x8xf32>
    %cst_44 = arith.constant dense<0xFF800000> : vector<8xf32>
    %113 = vector.multi_reduction <maximumf>, %112, %cst_44 [1] : vector<8x8xf32> to vector<8xf32>
    %114 = vector.shape_cast %113 : vector<8xf32> to vector<8x1xf32>
    %115 = vector.broadcast %114 : vector<8x1xf32> to vector<8x8xf32>
    %116 = arith.subf %112, %115 : vector<8x8xf32>
    %117 = math.exp %116 : vector<8x8xf32>
    %cst_45 = arith.constant dense<0.000000e+00> : vector<8xf32>
    %118 = vector.multi_reduction <add>, %117, %cst_45 [1] : vector<8x8xf32> to vector<8xf32>
    %119 = vector.shape_cast %118 : vector<8xf32> to vector<8x1xf32>
    %120 = vector.broadcast %119 : vector<8x1xf32> to vector<8x8xf32>
    %121 = arith.divf %117, %120 : vector<8x8xf32>
    %122 = arith.truncf %121 : vector<8x8xf32> to vector<8x8xbf16>
    %123 = arith.truncf %111 : vector<8x8xf32> to vector<8x8xbf16>
    %cst_46 = arith.constant dense<0.000000e+00> : vector<8x8xf32>
    %124 = tpu.matmul %122, %123, %cst_46 {dimension_numbers = #tpu.dot_dimension_numbers<[1], [0], [0], [1], [0, 0, 1, 1], [], []>} : vector<8x8xbf16>, vector<8x8xbf16>, vector<8x8xf32> -> vector<8x8xf32>
    %125 = arith.truncf %124 : vector<8x8xf32> to vector<8x8xbf16>
    %c8_47 = arith.constant 8 : index
    %c0_48 = arith.constant 0 : index
    %126 = vector.load %arg2[%c8_47, %c0_48] : memref<32x32xbf16, #tpu.memory_space<vmem>>, vector<8x32xbf16>
    %cst_49 = arith.constant dense<0.000000e+00> : vector<8x32xf32>
    %127 = tpu.matmul %125, %126, %cst_49 {dimension_numbers = #tpu.dot_dimension_numbers<[1], [0], [0], [1], [0, 0, 1, 1], [], []>} : vector<8x8xbf16>, vector<8x32xbf16>, vector<8x32xf32> -> vector<8x32xf32>
    %128 = arith.addf %108, %127 : vector<8x32xf32>
    %129 = vector.extract_strided_slice %10 {offsets = [8, 16], sizes = [8, 8], strides = [1, 1]} : vector<16x96xf32> to vector<8x8xf32>
    %130 = vector.extract_strided_slice %10 {offsets = [8, 48], sizes = [8, 8], strides = [1, 1]} : vector<16x96xf32> to vector<8x8xf32>
    %131 = vector.extract_strided_slice %10 {offsets = [8, 80], sizes = [8, 8], strides = [1, 1]} : vector<16x96xf32> to vector<8x8xf32>
    %cst_50 = arith.constant dense<0.000000e+00> : vector<8x8xf32>
    %132 = tpu.matmul %129, %130, %cst_50 {dimension_numbers = #tpu.dot_dimension_numbers<[1], [1], [0], [0], [0, 0, 1, 0], [], []>} : vector<8x8xf32>, vector<8x8xf32>, vector<8x8xf32> -> vector<8x8xf32>
    %cst_51 = arith.constant dense<0xFF800000> : vector<8xf32>
    %133 = vector.multi_reduction <maximumf>, %132, %cst_51 [1] : vector<8x8xf32> to vector<8xf32>
    %134 = vector.shape_cast %133 : vector<8xf32> to vector<8x1xf32>
    %135 = vector.broadcast %134 : vector<8x1xf32> to vector<8x8xf32>
    %136 = arith.subf %132, %135 : vector<8x8xf32>
    %137 = math.exp %136 : vector<8x8xf32>
    %cst_52 = arith.constant dense<0.000000e+00> : vector<8xf32>
    %138 = vector.multi_reduction <add>, %137, %cst_52 [1] : vector<8x8xf32> to vector<8xf32>
    %139 = vector.shape_cast %138 : vector<8xf32> to vector<8x1xf32>
    %140 = vector.broadcast %139 : vector<8x1xf32> to vector<8x8xf32>
    %141 = arith.divf %137, %140 : vector<8x8xf32>
    %142 = arith.truncf %141 : vector<8x8xf32> to vector<8x8xbf16>
    %143 = arith.truncf %131 : vector<8x8xf32> to vector<8x8xbf16>
    %cst_53 = arith.constant dense<0.000000e+00> : vector<8x8xf32>
    %144 = tpu.matmul %142, %143, %cst_53 {dimension_numbers = #tpu.dot_dimension_numbers<[1], [0], [0], [1], [0, 0, 1, 1], [], []>} : vector<8x8xbf16>, vector<8x8xbf16>, vector<8x8xf32> -> vector<8x8xf32>
    %145 = arith.truncf %144 : vector<8x8xf32> to vector<8x8xbf16>
    %c16_54 = arith.constant 16 : index
    %c0_55 = arith.constant 0 : index
    %146 = vector.load %arg2[%c16_54, %c0_55] : memref<32x32xbf16, #tpu.memory_space<vmem>>, vector<8x32xbf16>
    %cst_56 = arith.constant dense<0.000000e+00> : vector<8x32xf32>
    %147 = tpu.matmul %145, %146, %cst_56 {dimension_numbers = #tpu.dot_dimension_numbers<[1], [0], [0], [1], [0, 0, 1, 1], [], []>} : vector<8x8xbf16>, vector<8x32xbf16>, vector<8x32xf32> -> vector<8x32xf32>
    %148 = arith.addf %128, %147 : vector<8x32xf32>
    %149 = vector.extract_strided_slice %10 {offsets = [8, 24], sizes = [8, 8], strides = [1, 1]} : vector<16x96xf32> to vector<8x8xf32>
    %150 = vector.extract_strided_slice %10 {offsets = [8, 56], sizes = [8, 8], strides = [1, 1]} : vector<16x96xf32> to vector<8x8xf32>
    %151 = vector.extract_strided_slice %10 {offsets = [8, 88], sizes = [8, 8], strides = [1, 1]} : vector<16x96xf32> to vector<8x8xf32>
    %cst_57 = arith.constant dense<0.000000e+00> : vector<8x8xf32>
    %152 = tpu.matmul %149, %150, %cst_57 {dimension_numbers = #tpu.dot_dimension_numbers<[1], [1], [0], [0], [0, 0, 1, 0], [], []>} : vector<8x8xf32>, vector<8x8xf32>, vector<8x8xf32> -> vector<8x8xf32>
    %cst_58 = arith.constant dense<0xFF800000> : vector<8xf32>
    %153 = vector.multi_reduction <maximumf>, %152, %cst_58 [1] : vector<8x8xf32> to vector<8xf32>
    %154 = vector.shape_cast %153 : vector<8xf32> to vector<8x1xf32>
    %155 = vector.broadcast %154 : vector<8x1xf32> to vector<8x8xf32>
    %156 = arith.subf %152, %155 : vector<8x8xf32>
    %157 = math.exp %156 : vector<8x8xf32>
    %cst_59 = arith.constant dense<0.000000e+00> : vector<8xf32>
    %158 = vector.multi_reduction <add>, %157, %cst_59 [1] : vector<8x8xf32> to vector<8xf32>
    %159 = vector.shape_cast %158 : vector<8xf32> to vector<8x1xf32>
    %160 = vector.broadcast %159 : vector<8x1xf32> to vector<8x8xf32>
    %161 = arith.divf %157, %160 : vector<8x8xf32>
    %162 = arith.truncf %161 : vector<8x8xf32> to vector<8x8xbf16>
    %163 = arith.truncf %151 : vector<8x8xf32> to vector<8x8xbf16>
    %cst_60 = arith.constant dense<0.000000e+00> : vector<8x8xf32>
    %164 = tpu.matmul %162, %163, %cst_60 {dimension_numbers = #tpu.dot_dimension_numbers<[1], [0], [0], [1], [0, 0, 1, 1], [], []>} : vector<8x8xbf16>, vector<8x8xbf16>, vector<8x8xf32> -> vector<8x8xf32>
    %165 = arith.truncf %164 : vector<8x8xf32> to vector<8x8xbf16>
    %c24_61 = arith.constant 24 : index
    %c0_62 = arith.constant 0 : index
    %166 = vector.load %arg2[%c24_61, %c0_62] : memref<32x32xbf16, #tpu.memory_space<vmem>>, vector<8x32xbf16>
    %cst_63 = arith.constant dense<0.000000e+00> : vector<8x32xf32>
    %167 = tpu.matmul %165, %166, %cst_63 {dimension_numbers = #tpu.dot_dimension_numbers<[1], [0], [0], [1], [0, 0, 1, 1], [], []>} : vector<8x8xbf16>, vector<8x32xbf16>, vector<8x32xf32> -> vector<8x32xf32>
    %168 = arith.addf %148, %167 : vector<8x32xf32>
    %169 = tpu.concatenate %89, %168 in 0 : vector<8x32xf32>, vector<8x32xf32> -> vector<16x32xf32>
    %170 = vector.broadcast %2 : vector<1x32xf32> to vector<16x32xf32>
    %171 = arith.addf %169, %170 : vector<16x32xf32>
    %172 = arith.addf %0, %171 : vector<16x32xf32>
    %cst_64 = arith.constant dense<0.000000e+00> : vector<16xf32>
    %173 = vector.multi_reduction <add>, %172, %cst_64 [1] : vector<16x32xf32> to vector<16xf32>
    %174 = vector.shape_cast %173 : vector<16xf32> to vector<16x1xf32>
    %cst_65 = arith.constant 3.200000e+01 : f32
    %175 = vector.broadcast %cst_65 : f32 to vector<16x1xf32>
    %176 = arith.divf %174, %175 : vector<16x1xf32>
    %177 = vector.broadcast %176 : vector<16x1xf32> to vector<16x32xf32>
    %178 = arith.subf %172, %177 : vector<16x32xf32>
    %179 = arith.mulf %178, %178 : vector<16x32xf32>
    %cst_66 = arith.constant dense<0.000000e+00> : vector<16xf32>
    %180 = vector.multi_reduction <add>, %179, %cst_66 [1] : vector<16x32xf32> to vector<16xf32>
    %181 = vector.shape_cast %180 : vector<16xf32> to vector<16x1xf32>
    %cst_67 = arith.constant 3.200000e+01 : f32
    %182 = vector.broadcast %cst_67 : f32 to vector<16x1xf32>
    %183 = arith.divf %181, %182 : vector<16x1xf32>
    %184 = vector.broadcast %176 : vector<16x1xf32> to vector<16x32xf32>
    %185 = arith.subf %172, %184 : vector<16x32xf32>
    %cst_68 = arith.constant 9.99999974E-6 : f32
    %186 = vector.broadcast %cst_68 : f32 to vector<16x1xf32>
    %187 = arith.addf %183, %186 : vector<16x1xf32>
    %188 = math.rsqrt %187 : vector<16x1xf32>
    %189 = vector.broadcast %188 : vector<16x1xf32> to vector<16x32xf32>
    %190 = arith.mulf %185, %189 : vector<16x32xf32>
    %191 = vector.broadcast %3 : vector<1x32xf32> to vector<16x32xf32>
    %192 = arith.mulf %190, %191 : vector<16x32xf32>
    %193 = vector.broadcast %4 : vector<1x32xf32> to vector<16x32xf32>
    %194 = arith.addf %192, %193 : vector<16x32xf32>
    %195 = arith.truncf %194 : vector<16x32xf32> to vector<16x32xbf16>
    %c0_69 = arith.constant 0 : index
    %c0_70 = arith.constant 0 : index
    %196 = vector.load %arg3[%c0_69, %c0_70] : memref<32x64xbf16, #tpu.memory_space<vmem>>, vector<32x64xbf16>
    %cst_71 = arith.constant dense<0.000000e+00> : vector<16x64xf32>
    %197 = tpu.matmul %195, %196, %cst_71 {dimension_numbers = #tpu.dot_dimension_numbers<[1], [0], [0], [1], [0, 0, 1, 1], [], []>} : vector<16x32xbf16>, vector<32x64xbf16>, vector<16x64xf32> -> vector<16x64xf32>
    %198 = vector.broadcast %8 : vector<1x64xf32> to vector<16x64xf32>
    %199 = arith.addf %197, %198 : vector<16x64xf32>
    %cst_72 = arith.constant 0.000000e+00 : f32
    %200 = vector.broadcast %cst_72 : f32 to vector<16x64xf32>
    %201 = arith.maximumf %199, %200 : vector<16x64xf32>
    %202 = arith.truncf %201 : vector<16x64xf32> to vector<16x64xbf16>
    %c0_73 = arith.constant 0 : index
    %c0_74 = arith.constant 0 : index
    %203 = vector.load %arg4[%c0_73, %c0_74] : memref<64x32xbf16, #tpu.memory_space<vmem>>, vector<64x32xbf16>
    %cst_75 = arith.constant dense<0.000000e+00> : vector<16x32xf32>
    %204 = tpu.matmul %202, %203, %cst_75 {dimension_numbers = #tpu.dot_dimension_numbers<[1], [0], [0], [1], [0, 0, 1, 1], [], []>} : vector<16x64xbf16>, vector<64x32xbf16>, vector<16x32xf32> -> vector<16x32xf32>
    %205 = vector.broadcast %5 : vector<1x32xf32> to vector<16x32xf32>
    %206 = arith.addf %204, %205 : vector<16x32xf32>
    %cst_76 = arith.constant 0.000000e+00 : f32
    %207 = vector.broadcast %cst_76 : f32 to vector<16x32xf32>
    %208 = arith.maximumf %206, %207 : vector<16x32xf32>
    %209 = arith.addf %194, %208 : vector<16x32xf32>
    %cst_77 = arith.constant dense<0.000000e+00> : vector<16xf32>
    %210 = vector.multi_reduction <add>, %209, %cst_77 [1] : vector<16x32xf32> to vector<16xf32>
    %211 = vector.shape_cast %210 : vector<16xf32> to vector<16x1xf32>
    %cst_78 = arith.constant 3.200000e+01 : f32
    %212 = vector.broadcast %cst_78 : f32 to vector<16x1xf32>
    %213 = arith.divf %211, %212 : vector<16x1xf32>
    %214 = vector.broadcast %213 : vector<16x1xf32> to vector<16x32xf32>
    %215 = arith.subf %209, %214 : vector<16x32xf32>
    %216 = arith.mulf %215, %215 : vector<16x32xf32>
    %cst_79 = arith.constant dense<0.000000e+00> : vector<16xf32>
    %217 = vector.multi_reduction <add>, %216, %cst_79 [1] : vector<16x32xf32> to vector<16xf32>
    %218 = vector.shape_cast %217 : vector<16xf32> to vector<16x1xf32>
    %cst_80 = arith.constant 3.200000e+01 : f32
    %219 = vector.broadcast %cst_80 : f32 to vector<16x1xf32>
    %220 = arith.divf %218, %219 : vector<16x1xf32>
    %221 = vector.broadcast %213 : vector<16x1xf32> to vector<16x32xf32>
    %222 = arith.subf %209, %221 : vector<16x32xf32>
    %cst_81 = arith.constant 9.99999974E-6 : f32
    %223 = vector.broadcast %cst_81 : f32 to vector<16x1xf32>
    %224 = arith.addf %220, %223 : vector<16x1xf32>
    %225 = math.rsqrt %224 : vector<16x1xf32>
    %226 = vector.broadcast %225 : vector<16x1xf32> to vector<16x32xf32>
    %227 = arith.mulf %222, %226 : vector<16x32xf32>
    %228 = vector.broadcast %6 : vector<1x32xf32> to vector<16x32xf32>
    %229 = arith.mulf %227, %228 : vector<16x32xf32>
    %230 = vector.broadcast %7 : vector<1x32xf32> to vector<16x32xf32>
    %231 = arith.addf %229, %230 : vector<16x32xf32>
    %232 = vector.extract_strided_slice %231 {offsets = [0, 0], sizes = [8, 32], strides = [1, 1]} : vector<16x32xf32> to vector<8x32xf32>
    %233 = vector.extract_strided_slice %231 {offsets = [8, 0], sizes = [8, 32], strides = [1, 1]} : vector<16x32xf32> to vector<8x32xf32>
    %234 = tpu.concatenate %232, %233, %23, %42, %62, %82, %102, %121, %141, %161 in 1 : vector<8x32xf32>, vector<8x32xf32>, vector<8x8xf32>, vector<8x8xf32>, vector<8x8xf32>, vector<8x8xf32>, vector<8x8xf32>, vector<8x8xf32>, vector<8x8xf32>, vector<8x8xf32> -> vector<8x128xf32>
    %c0_82 = arith.constant 0 : index
    %c0_83 = arith.constant 0 : index
    %235 = vector.load %arg6[%c0_82, %c0_83] : memref<8x128xf32, #tpu.memory_space<vmem>>, vector<8x128xf32>
    tpu.vector_store %arg6[%c0_82, %c0_83], %234 {strides = array<i32>} : memref<8x128xf32, #tpu.memory_space<vmem>>, vector<8x128xf32>,
    return
  }
}

</mosaic_0001>

<bundles_post_ra>
// kernel: encoder_layer_forward.1
= control target key start
LH: loop header
LB: loop body
LE: loop exit
PB: predicated region body
PF: predicated region fallthrough
CT: control target
= control target key end

     0   :  { %11 = vsyncpa [#allocation3], 0  ;;  %s2696_s0 = inlined_call_operand.vmem [shape: f32[16,32], index: 0, kind: input, shape index: {}]   ;;  %s2697_s1 = inlined_call_operand.vmem [shape: bf16[32,96], index: 1, kind: input, shape index: {}]   ;;  %s2698_s2 = inlined_call_operand.vmem [shape: bf16[32,32], index: 2, kind: input, shape index: {}]   ;;  %s2699_s3 = inlined_call_operand.hbm [shape: bf16[32,64], index: 3, kind: input, shape index: {}]   ;;  %s2700_s4 = inlined_call_operand.vmem [shape: bf16[64,32], index: 4, kind: input, shape index: {}]   ;;  %s2701_s5 = inlined_call_operand.hbm [shape: f32[8,64], index: 5, kind: input, shape index: {}]   ;;  %s2702_s6 = inlined_call_operand.vmem [shape: f32[8,128], index: 6, kind: output, shape index: {}]  }
   0x1   :  { %12 = vsyncpa [#allocation5], 0  ;;  %s2284_s21 = smov [#allocation2]   ;;  %s2236_s25 = scalar_lea.hbm %s2699_s3, 256 }
   0x2   :  { %s24_s22 = sshll.u32 %s2284_s21, 4  ;;  %p2237_p0 = scmp.ne.s32.totalorder %s2699_s3, %s2236_s25  ;;  %s25_s22 = int_to_ptr.vmem [resolvable:$true] %s24_s22 }
   0x3   :  { %p2240_p1 = scmp.lt.u32.totalorder %s2236_s25, %s2699_s3 }
   0x5   :  { %p2242_p2 = pnand %p2240_p1, %p2237_p0 }
   0x7   :  { %2245 = shalt.err (!%p2242_p2)
}
   0x8   :  { %s2246_s30 = scalar_lea.vmem %s25_s22, 256  ;;  %p2251_p4 = scmp.lt.s32.totalorder %s25_s22, %s25_s22 }
   0x9   :  { %p2247_p3 = scmp.ne.s32.totalorder %s25_s22, %s2246_s30  ;;  %p2252_p5 = scmp.lt.s32.totalorder %s2246_s30, %s2246_s30 }
   0xb   :  { %p2253_p6 = por %p2252_p5, %p2251_p4 }
   0xd   :  { %p2254_p7 = pnand %p2253_p6, %p2247_p3 }
   0xf   :  { %2257 = shalt.err (!%p2254_p7)
}
  0x10   :  { %s2285_s7 = smov 64   ;;  %s2286_s8 = smov 4  }
  0x11   :  { %30 = dma.hbm_to_vmem [thread:$0]  %s2699_s3, 256, %s25_s22, [#allocation3], %s2285_s7, %s2285_s7, %s2286_s8  }
  0x12   :  { %s2287_s11 = smov [#allocation4]   ;;  %s2258_s15 = scalar_lea.hbm %s2701_s5, 128 }
  0x13   :  { %s39_s12 = sshll.u32 %s2287_s11, 4  ;;  %p2259_p8 = scmp.ne.s32.totalorder %s2701_s5, %s2258_s15  ;;  %s40_s12 = int_to_ptr.vmem [resolvable:$true] %s39_s12 }
  0x14   :  { %p2262_p9 = scmp.lt.u32.totalorder %s2258_s15, %s2701_s5 }
  0x16   :  { %p2264_p10 = pnand %p2262_p9, %p2259_p8 }
  0x18   :  { %2267 = shalt.err (!%p2264_p10)
}
  0x19   :  { %s2268_s20 = scalar_lea.vmem %s40_s12, 128  ;;  %p2273_p12 = scmp.lt.s32.totalorder %s40_s12, %s40_s12 }
  0x1a   :  { %p2269_p11 = scmp.ne.s32.totalorder %s40_s12, %s2268_s20  ;;  %p2274_p13 = scmp.lt.s32.totalorder %s2268_s20, %s2268_s20 }
  0x1c   :  { %p2275_p0 = por %p2274_p13, %p2273_p12 }
  0x1e   :  { %p2276_p1 = pnand %p2275_p0, %p2269_p11 }
  0x20   :  { %2279 = shalt.err (!%p2276_p1)
}
  0x21   :  { %42 = dma.hbm_to_vmem [thread:$0]  %s2701_s5, 128, %s40_s12, [#allocation5]  }
  0x22   :  { %2280 = dma.done.wait [#allocation3], 256  }
  0x23   :  { %2281 = vsyncadd [#allocation3], 4294967040 }
  0x24   :  { %2282 = dma.done.wait [#allocation5], 128  }
  0x25   :  { %2283 = vsyncadd [#allocation5], 4294967168  ;;  %v2288_v0 = vmov 0.0   ;;  %vm2289_vm0 = vmmov 0   ;;  %v2188_v1 = vld [vmem:[%s2697_s1] sm:$0xff]   ;;  %v2189_v2 = vld [vmem:[%s2697_s1 + $0x8] sm:$0xff]  }
  0x26   :  { %2007 = vmatprep.subr.bf16.mxu0 %v2288_v0  ;;  %2011 = vmatprep.mubr.msk.bf16.mxu0 %vm2289_vm0, %v2288_v0  ;;  %v2377_v3 = vld [vmem:[%s2696_s0] sm:$0xff]  ;;  %v2382_v4 = vld [vmem:[%s2696_s0 + $0x8] sm:$0xff]  ;;  %vm76_vm1 = vcmask 261120   ;;  %s2290_s1 = smov 96   ;;  %vm124_vm2 = vcmask 64512   ;;  %vm218_vm3 = vcmask 1043456  }
  0x27   :  { %2015 = vmatprep.subr.mxu1 %v2288_v0  ;;  %2017 = vmatprep.mubr.msk.f32.mxu1 %vm2289_vm0, %v2288_v0  ;;  %v52_v5 = vpack.c.bf16 %v2382_v4, %v2377_v3  ;;  %s2291_s0 = smov 88   ;;  %s2292_s29 = smov 120   ;;  %v403_v40 = vld [vmem:[%s2698_s2 + $0x4] sm:$0xf]  ;;  %v263_v46 = vld [vmem:[%s2698_s2] sm:$0xf] }
  0x28   :  { %2008 = vmatpush3.bf16.msra.mxu0 %v2188_v1  ;;  %s2293_s30 = smov 56   ;;  %s2294_s8 = smov 80   ;;  %v2441_v41 = vsel %vm218_vm3, %v403_v40, 0  ;;  %v2455_v49 = vsel %vm218_vm3, %v263_v46, 0  ;;  %vm1752_vm4 = vcmask 523264   ;;  %vm1877_vm5 = vcmask 588800  }
  0x29   :  { %2009 = vmatprep.subr.bf16.mxu0 %v2288_v0  ;;  %s2295_s9 = smov 112   ;;  %s2296_s14 = smov 48   ;;  %vm1879_vm6 = vcmask 654336   ;;  %vm1881_vm7 = vcmask 719872   ;;  %vm1883_vm8 = vcmask 785408   ;;  %vm1885_vm9 = vcmask 850944  }
  0x2a   :  { %s2297_s15 = smov 72   ;;  %s2298_s16 = smov 104   ;;  %vm1887_vm10 = vcmask 916480   ;;  %vm1889_vm11 = vcmask 982016  }
  0x2b   :  { %s2299_s19 = smov 40  }
  0x2c   :  { %2010 = vmatpush3.bf16.msra.mxu0 %v2189_v2 }
  0x2d   :  { %2037 = vmatprep.subr.bf16.mxu0 %v2288_v0 }
  0x2f   :  { %2012 = vmatmul.mubr.msk.bf16.vlgmr.msra.gmra.mrb[0].mxu0 %vm76_vm1, %v52_v5 }
  0x30   :  { %2039 = vmatprep.mubr.msk.bf16.mxu0 %vm2289_vm0, %v2288_v0  ;;  %2038 = vmatpush3.bf16.msra.mxu0 %v2441_v41 }
  0x31   :  { %2049 = vmatprep.subr.mxu0 %v2288_v0 }
 0x102   :  { %v2391_v6 = vpop.f32.mrb[0].mxu0 }
 0x103   :  { %122 = vrot.lane.b32.xlu0 %v2391_v6, %s2290_s1  ;;  %v2013_v7 = vpop.f32.mrb[1].mxu0  ;;  %v2397_v8 = vpack.c.bf16 %v2391_v6, %v2391_v6 }
 0x104   :  { %v2399_v9 = vpop.f32.mrb[2].mxu0 }
 0x105   :  { %213 = vrot.lane.b32.xlu1 %v2397_v8, %s2285_s7  ;;  %v2014_v10 = vpop.f32.mrb[3].mxu0 }
 0x175   :  { %v123_v11 = vpop.permute.xlu0 %122 }
 0x176   :  { %2016 = vmatpush3.xpose.msk.msra.mxu1 %vm124_vm2, %v123_v11 }
 0x177   :  { %v214_v12 = vpop.permute.xlu1 %213  ;;  %2020 = vmatprep.subr.bf16.mxu1 %v2288_v0 }
 0x178   :  { %v220_v13 = vsel %vm218_vm3, %v214_v12, 0 }
 0x179   :  { %2018 = vmatmul.mubr.msk.f32.vlgmr.msra.gmra.mrb[0].mxu1 %vm124_vm2, %v2391_v6 }
 0x17a   :  { %2021 = vmatpush3.bf16.msra.mxu1 %v220_v13  ;;  %2022 = vmatprep.mubr.msk.bf16.mxu1 %vm2289_vm0, %v2288_v0 }
 0x17b   :  { %2026 = vmatprep.subr.mxu1 %v2288_v0 }
 0x24c   :  { %v195_v14 = vpop.f32.mrb[0].mxu1 }
 0x24d   :  { %v2019_v15 = vpop.f32.mrb[1].mxu1  ;;  %v199_v16 = vsel %vm124_vm2, %v195_v14, -inf }
 0x24e   :  { %200 = vmax.xlane.f32.xlu0 %v199_v16 }
 0x2db   :  { %v201_v17 = vpop.xlane.xlu0 %200 }
 0x2dc   :  { %v202_v18 = vsub.f32 %v195_v14, %v201_v17 }
 0x2de   :  { %v203_v19 = vmul.f32 1.442695, %v202_v18 }
 0x2e0   :  { %2196 = vpow2.f32 %v203_v19 }
 0x2ea   :  { %v2197_v20 = vpop.eup %2196 }
 0x2eb   :  { %v205_v21 = vsel %vm124_vm2, %v2197_v20, 0.0 }
 0x2ec   :  { %206 = vadd.xlane.f32.xlu1 %v205_v21 }
 0x2fd   :  { %266 = vrot.lane.b32.xlu1 %v2391_v6, %s2291_s0 }
 0x301   :  { %264 = vrot.lane.b32.xlu1 %v2391_v6, %s2292_s29 }
 0x379   :  { %v207_v22 = vpop.xlane.xlu1 %206 }
 0x37a   :  { %2198 = vrcp.f32 %v207_v22 }
 0x37d   :  { %v267_v26 = vpop.permute.xlu1 %266 }
 0x381   :  { %v265_v27 = vpop.permute.xlu1 %264 }
 0x384   :  { %v2199_v23 = vpop.eup %2198 }
 0x385   :  { %v2417_v24 = vmul.f32 %v2199_v23, %v2197_v20 }
 0x387   :  { %v210_v25 = vpack.c.bf16 %v2417_v24, %v2417_v24 }
 0x389   :  { %2023 = vmatmul.mubr.msk.bf16.vlgmr.msra.gmra.mrb[4].mxu1 %vm124_vm2, %v210_v25  ;;  %v635_v25 = vld [vmem:[%s2698_s2 + $0x8] sm:$0xf] }
 0x38a   :  { %2027 = vmatpush3.xpose.msk.msra.mxu1 %vm124_vm2, %v267_v26  ;;  %2028 = vmatprep.mubr.msk.f32.mxu1 %vm2289_vm0, %v2288_v0  ;;  %v2501_v26 = vsel %vm218_vm3, %v635_v25, 0 }
 0x38b   :  { %2031 = vmatprep.subr.bf16.mxu1 %v2288_v0 }
 0x391   :  { %2029 = vmatmul.mubr.msk.f32.vlgmr.msra.gmra.mrb[2].mxu1 %vm124_vm2, %v265_v27 }
 0x392   :  { %2033 = vmatprep.mubr.msk.bf16.mxu1 %vm2289_vm0, %v2288_v0 }
 0x45c   :  { %v256_v28 = vpop.f32.mrb[4].mxu1 }
 0x45d   :  { %v2024_v29 = vpop.f32.mrb[5].mxu1  ;;  %v262_v50 = vpack.c.bf16 %v256_v28, %v256_v28 }
 0x45e   :  { %v259_v30 = vpop.f32.mrb[6].mxu1 }
 0x45f   :  { %v2025_v31 = vpop.f32.mrb[7].mxu1 }
 0x464   :  { %v338_v32 = vpop.f32.mrb[2].mxu1 }
 0x465   :  { %v2030_v33 = vpop.f32.mrb[3].mxu1  ;;  %v342_v34 = vsel %vm124_vm2, %v338_v32, -inf }
 0x466   :  { %343 = vmax.xlane.f32.xlu1 %v342_v34 }
 0x4f3   :  { %v344_v35 = vpop.xlane.xlu1 %343 }
 0x4f4   :  { %v345_v36 = vsub.f32 %v338_v32, %v344_v35 }
 0x4f6   :  { %v346_v37 = vmul.f32 1.442695, %v345_v36 }
 0x4f8   :  { %2200 = vpow2.f32 %v346_v37 }
 0x502   :  { %v2201_v38 = vpop.eup %2200 }
 0x503   :  { %v348_v39 = vsel %vm124_vm2, %v2201_v38, 0.0 }
 0x504   :  { %349 = vadd.xlane.f32.xlu0 %v348_v39 }
 0x51a   :  { %354 = vrot.lane.b32.xlu0 %v2397_v8, %s2293_s30 }
 0x51e   :  { %498 = vrot.lane.b32.xlu0 %v2391_v6, %s2294_s8 }
 0x522   :  { %496 = vrot.lane.b32.xlu0 %v2391_v6, %s2295_s9 }
 0x591   :  { %v350_v42 = vpop.xlane.xlu0 %349 }
 0x592   :  { %2202 = vrcp.f32 %v350_v42 }
 0x595   :  { %v355_v43 = vpop.permute.xlu0 %354 }
 0x596   :  { %v360_v44 = vsel %vm218_vm3, %v355_v43, 0 }
 0x597   :  { %2032 = vmatpush3.bf16.msra.mxu1 %v360_v44 }
 0x598   :  { %2043 = vmatprep.subr.bf16.mxu1 %v2288_v0 }
 0x599   :  { %v499_v55 = vpop.permute.xlu0 %498 }
 0x59c   :  { %v2203_v45 = vpop.eup %2202 }
 0x59d   :  { %v2450_v47 = vmul.f32 %v2203_v45, %v2201_v38  ;;  %v497_v59 = vpop.permute.xlu0 %496 }
 0x59f   :  { %v353_v48 = vpack.c.bf16 %v2450_v47, %v2450_v47 }
 0x5a1   :  { %2034 = vmatmul.mubr.msk.bf16.vlgmr.msra.gmra.mrb[8].mxu1 %vm124_vm2, %v353_v48 }
 0x5a2   :  { %2044 = vmatpush3.bf16.msra.mxu1 %v2455_v49  ;;  %2045 = vmatprep.mubr.msk.bf16.mxu1 %vm2289_vm0, %v2288_v0 }
 0x5a3   :  { %2060 = vmatprep.subr.bf16.mxu1 %v2288_v0 }
 0x5a9   :  { %2046 = vmatmul.mubr.msk.bf16.vlgmr.msra.gmra.mrb[12].mxu1 %vm124_vm2, %v262_v50 }
 0x5aa   :  { %2062 = vmatprep.mubr.msk.bf16.mxu1 %vm2289_vm0, %v2288_v0  ;;  %2061 = vmatpush3.bf16.msra.mxu1 %v2501_v26 }
 0x5ab   :  { %2071 = vmatprep.subr.bf16.mxu1 %v2288_v0 }
 0x674   :  { %v396_v51 = vpop.f32.mrb[8].mxu1 }
 0x675   :  { %v402_v52 = vpack.c.bf16 %v396_v51, %v396_v51  ;;  %v2035_v53 = vpop.f32.mrb[9].mxu1 }
 0x676   :  { %v399_v54 = vpop.f32.mrb[10].mxu1 }
 0x677   :  { %v2036_v56 = vpop.f32.mrb[11].mxu1  ;;  %2040 = vmatmul.mubr.msk.bf16.vlgmr.msra.gmra.mrb[4].mxu0 %vm124_vm2, %v402_v52 }
 0x678   :  { %2050 = vmatpush3.xpose.msk.msra.mxu0 %vm124_vm2, %v499_v55  ;;  %2051 = vmatprep.mubr.msk.f32.mxu0 %vm2289_vm0, %v2288_v0  ;;  %v822_v56 = vld [vmem:[%s2698_s2 + $0xc] sm:$0xf] }
 0x679   :  { %2054 = vmatprep.subr.bf16.mxu0 %v2288_v0 }
 0x67c   :  { %v490_v57 = vpop.f32.mrb[12].mxu1 }
 0x67d   :  { %v2047_v58 = vpop.f32.mrb[13].mxu1 }
 0x67e   :  { %v493_v60 = vpop.f32.mrb[14].mxu1 }
 0x67f   :  { %v2048_v61 = vpop.f32.mrb[15].mxu1  ;;  %2052 = vmatmul.mubr.msk.f32.vlgmr.msra.gmra.mrb[8].mxu0 %vm124_vm2, %v497_v59 }
 0x680   :  { %2056 = vmatprep.mubr.msk.bf16.mxu0 %vm2289_vm0, %v2288_v0 }
 0x74a   :  { %v444_v62 = vpop.f32.mrb[4].mxu0 }
 0x74b   :  { %v2473_v63 = vadd.f32 %v490_v57, %v444_v62  ;;  %v2041_v1 = vpop.f32.mrb[5].mxu0  ;;  %v2543_v57 = vsel %vm218_vm3, %v822_v56, 0 }
 0x74c   :  { %v447_v2 = vpop.f32.mrb[6].mxu0 }
 0x74d   :  { %v2042_v5 = vpop.f32.mrb[7].mxu0 }
 0x752   :  { %v570_v7 = vpop.f32.mrb[8].mxu0 }
 0x753   :  { %v2053_v10 = vpop.f32.mrb[9].mxu0  ;;  %v574_v11 = vsel %vm124_vm2, %v570_v7, -inf }
 0x754   :  { %575 = vmax.xlane.f32.xlu1 %v574_v11  ;;  %v2553_v10 = vpack.c.bf16 %v2399_v9, %v2399_v9 }
 0x765   :  { %586 = vrot.lane.b32.xlu1 %v2397_v8, %s2296_s14 }
 0x769   :  { %685 = vrot.lane.b32.xlu1 %v2391_v6, %s2297_s15 }
 0x76d   :  { %683 = vrot.lane.b32.xlu1 %v2391_v6, %s2298_s16 }
 0x7e1   :  { %v576_v12 = vpop.xlane.xlu1 %575 }
 0x7e2   :  { %v577_v13 = vsub.f32 %v570_v7, %v576_v12 }
 0x7e4   :  { %v578_v14 = vmul.f32 1.442695, %v577_v13 }
 0x7e5   :  { %v587_v15 = vpop.permute.xlu1 %586 }
 0x7e6   :  { %2204 = vpow2.f32 %v578_v14  ;;  %v592_v16 = vsel %vm218_vm3, %v587_v15, 0 }
 0x7e7   :  { %2055 = vmatpush3.bf16.msra.mxu0 %v592_v16 }
 0x7e8   :  { %2066 = vmatprep.subr.mxu0 %v2288_v0 }
 0x7e9   :  { %v686_v22 = vpop.permute.xlu1 %685 }
 0x7ed   :  { %v684_v23 = vpop.permute.xlu1 %683 }
 0x7f0   :  { %v2205_v17 = vpop.eup %2204 }
 0x7f1   :  { %v580_v18 = vsel %vm124_vm2, %v2205_v17, 0.0 }
 0x7f2   :  { %581 = vadd.xlane.f32.xlu0 %v580_v18 }
 0x87f   :  { %v582_v19 = vpop.xlane.xlu0 %581 }
 0x880   :  { %2206 = vrcp.f32 %v582_v19 }
 0x88a   :  { %v2207_v20 = vpop.eup %2206 }
 0x88b   :  { %v2485_v21 = vmul.f32 %v2207_v20, %v2205_v17 }
 0x88d   :  { %v585_v6 = vpack.c.bf16 %v2485_v21, %v2485_v21 }
 0x88f   :  { %2057 = vmatmul.mubr.msk.bf16.vlgmr.msra.gmra.mrb[12].mxu0 %vm124_vm2, %v585_v6 }
 0x890   :  { %2067 = vmatpush3.xpose.msk.msra.mxu0 %vm124_vm2, %v686_v22  ;;  %2068 = vmatprep.mubr.msk.f32.mxu0 %vm2289_vm0, %v2288_v0 }
 0x891   :  { %2077 = vmatprep.subr.bf16.mxu0 %v2288_v0 }
 0x897   :  { %2069 = vmatmul.mubr.msk.f32.vlgmr.msra.gmra.mrb[10].mxu0 %vm124_vm2, %v684_v23 }
 0x898   :  { %2079 = vmatprep.mubr.msk.bf16.mxu0 %vm2289_vm0, %v2288_v0  ;;  %2078 = vmatpush3.bf16.msra.mxu0 %v2543_v57 }
 0x899   :  { %2088 = vmatprep.subr.bf16.mxu0 %v2288_v0 }
 0x962   :  { %v628_v27 = vpop.f32.mrb[12].mxu0 }
 0x963   :  { %v634_v28 = vpack.c.bf16 %v628_v27, %v628_v27  ;;  %v2058_v29 = vpop.f32.mrb[13].mxu0 }
 0x964   :  { %v631_v30 = vpop.f32.mrb[14].mxu0 }
 0x965   :  { %v2059_v31 = vpop.f32.mrb[15].mxu0  ;;  %2063 = vmatmul.mubr.msk.bf16.vlgmr.msra.gmra.mrb[16].mxu1 %vm124_vm2, %v634_v28 }
 0x966   :  { %2073 = vmatprep.mubr.msk.bf16.mxu1 %vm2289_vm0, %v2288_v0 }
 0x96a   :  { %v757_v32 = vpop.f32.mrb[10].mxu0 }
 0x96b   :  { %v2070_v33 = vpop.f32.mrb[11].mxu0  ;;  %v761_v34 = vsel %vm124_vm2, %v757_v32, -inf }
 0x96c   :  { %762 = vmax.xlane.f32.xlu1 %v761_v34 }
 0x97d   :  { %1010 = vrot.lane.b32.xlu1 %v2399_v9, %s2292_s29 }
 0x9f9   :  { %v763_v35 = vpop.xlane.xlu1 %762 }
 0x9fa   :  { %v764_v36 = vsub.f32 %v757_v32, %v763_v35 }
 0x9fc   :  { %v765_v37 = vmul.f32 1.442695, %v764_v36 }
 0x9fd   :  { %v1011_v55 = vpop.permute.xlu1 %1010 }
 0x9fe   :  { %2208 = vpow2.f32 %v765_v37 }
 0xa08   :  { %v2209_v38 = vpop.eup %2208 }
 0xa09   :  { %v767_v39 = vsel %vm124_vm2, %v2209_v38, 0.0 }
 0xa0a   :  { %768 = vadd.xlane.f32.xlu0 %v767_v39 }
 0xa20   :  { %773 = vrot.lane.b32.xlu0 %v2397_v8, %s2299_s19 }
 0xa24   :  { %871 = vrot.lane.b32.xlu0 %v2399_v9, %s2290_s1 }
 0xa28   :  { %1012 = vrot.lane.b32.xlu0 %v2399_v9, %s2291_s0 }
 0xa38   :  { %v676_v40 = vpop.f32.mrb[16].mxu1 }
 0xa39   :  { %v682_v42 = vadd.f32 %v676_v40, %v2473_v63  ;;  %v2064_v43 = vpop.f32.mrb[17].mxu1 }
 0xa3a   :  { %v679_v44 = vpop.f32.mrb[18].mxu1 }
 0xa3b   :  { %v2065_v45 = vpop.f32.mrb[19].mxu1 }
 0xa97   :  { %v769_v46 = vpop.xlane.xlu0 %768 }
 0xa98   :  { %2210 = vrcp.f32 %v769_v46 }
 0xa9b   :  { %v774_v48 = vpop.permute.xlu0 %773 }
 0xa9c   :  { %v779_v50 = vsel %vm218_vm3, %v774_v48, 0 }
 0xa9d   :  { %2072 = vmatpush3.bf16.msra.mxu1 %v779_v50 }
 0xa9e   :  { %2083 = vmatprep.subr.mxu1 %v2288_v0 }
 0xa9f   :  { %v872_v53 = vpop.permute.xlu0 %871 }
 0xaa2   :  { %v2211_v8 = vpop.eup %2210 }
 0xaa3   :  { %v2521_v51 = vmul.f32 %v2211_v8, %v2209_v38  ;;  %v1013_v54 = vpop.permute.xlu0 %1012 }
 0xaa5   :  { %v772_v52 = vpack.c.bf16 %v2521_v51, %v2521_v51 }
 0xaa7   :  { %2074 = vmatmul.mubr.msk.bf16.vlgmr.msra.gmra.mrb[20].mxu1 %vm124_vm2, %v772_v52 }
 0xaa8   :  { %2084 = vmatpush3.xpose.msk.msra.mxu1 %vm124_vm2, %v872_v53  ;;  %2085 = vmatprep.mubr.msk.f32.mxu1 %vm2289_vm0, %v2288_v0 }
 0xaa9   :  { %2094 = vmatprep.subr.mxu1 %v2288_v0 }
 0xaaf   :  { %2086 = vmatmul.mubr.msk.f32.vlgmr.msra.gmra.mrb[24].mxu1 %vm124_vm2, %v2399_v9 }
 0xab0   :  { %2095 = vmatpush3.xpose.msk.msra.mxu1 %vm124_vm2, %v1013_v54  ;;  %2096 = vmatprep.mubr.msk.f32.mxu1 %vm2289_vm0, %v2288_v0 }
 0xab1   :  { %2099 = vmatprep.subr.bf16.mxu1 %v2288_v0 }
 0xab3   :  { %2097 = vmatmul.mubr.msk.f32.vlgmr.msra.gmra.mrb[26].mxu1 %vm124_vm2, %v1011_v55 }
 0xab4   :  { %2101 = vmatprep.mubr.msk.bf16.mxu1 %vm2289_vm0, %v2288_v0 }
 0xb7a   :  { %v815_v58 = vpop.f32.mrb[20].mxu1 }
 0xb7b   :  { %v821_v59 = vpack.c.bf16 %v815_v58, %v815_v58  ;;  %v2075_v60 = vpop.f32.mrb[21].mxu1 }
 0xb7c   :  { %v818_v61 = vpop.f32.mrb[22].mxu1 }
 0xb7d   :  { %v2076_v62 = vpop.f32.mrb[23].mxu1  ;;  %2080 = vmatmul.mubr.msk.bf16.vlgmr.msra.gmra.mrb[16].mxu0 %vm124_vm2, %v821_v59 }
 0xb7e   :  { %2090 = vmatprep.mubr.msk.bf16.mxu0 %vm2289_vm0, %v2288_v0 }
 0xb82   :  { %v943_v63 = vpop.f32.mrb[24].mxu1 }
 0xb83   :  { %v2087_v1 = vpop.f32.mrb[25].mxu1  ;;  %v947_v18 = vsel %vm124_vm2, %v943_v63, -inf }
 0xb86   :  { %v1084_v2 = vpop.f32.mrb[26].mxu1 }
 0xb87   :  { %v2098_v5 = vpop.f32.mrb[27].mxu1  ;;  %v1088_v7 = vsel %vm124_vm2, %v1084_v2, -inf }
 0xb88   :  { %1089 = vmax.xlane.f32.xlu0 %v1088_v7 }
 0xb9e   :  { %1100 = vrot.lane.b32.xlu0 %v2553_v10, %s2293_s30 }
 0xc15   :  { %v1090_v11 = vpop.xlane.xlu0 %1089 }
 0xc16   :  { %v1091_v12 = vsub.f32 %v1084_v2, %v1090_v11 }
 0xc18   :  { %v1092_v13 = vmul.f32 1.442695, %v1091_v12 }
 0xc19   :  { %v1101_v14 = vpop.permute.xlu0 %1100 }
 0xc1a   :  { %2212 = vpow2.f32 %v1092_v13  ;;  %v1106_v15 = vsel %vm218_vm3, %v1101_v14, 0 }
 0xc1b   :  { %2100 = vmatpush3.bf16.msra.mxu1 %v1106_v15 }
 0xc1c   :  { %2111 = vmatprep.subr.bf16.mxu1 %v2288_v0 }
 0xc24   :  { %v2213_v16 = vpop.eup %2212 }
 0xc25   :  { %v1094_v17 = vsel %vm124_vm2, %v2213_v16, 0.0 }
 0xc26   :  { %1095 = vadd.xlane.f32.xlu1 %v1094_v17 }
 0xc2a   :  { %948 = vmax.xlane.f32.xlu1 %v947_v18 }
 0xc3b   :  { %961 = vrot.lane.b32.xlu1 %v2553_v10, %s2285_s7 }
 0xc3f   :  { %1237 = vrot.lane.b32.xlu1 %v2399_v9, %s2294_s8 }
 0xc43   :  { %1235 = vrot.lane.b32.xlu1 %v2399_v9, %s2295_s9 }
 0xc50   :  { %v863_v19 = vpop.f32.mrb[16].mxu0 }
 0xc51   :  { %v2567_v20 = vadd.f32 %v863_v19, %v682_v42  ;;  %v2081_v6 = vpop.f32.mrb[17].mxu0 }
 0xc52   :  { %v866_v22 = vpop.f32.mrb[18].mxu0 }
 0xc53   :  { %v2082_v23 = vpop.f32.mrb[19].mxu0 }
 0xcb3   :  { %v1096_v25 = vpop.xlane.xlu1 %1095 }
 0xcb4   :  { %2214 = vrcp.f32 %v1096_v25 }
 0xcb7   :  { %v949_v27 = vpop.xlane.xlu1 %948 }
 0xcb8   :  { %v950_v28 = vsub.f32 %v943_v63, %v949_v27 }
 0xcba   :  { %v951_v29 = vmul.f32 1.442695, %v950_v28 }
 0xcbb   :  { %v962_v30 = vpop.permute.xlu1 %961 }
 0xcbc   :  { %2216 = vpow2.f32 %v951_v29  ;;  %v967_v31 = vsel %vm218_vm3, %v962_v30, 0 }
 0xcbd   :  { %2089 = vmatpush3.bf16.msra.mxu0 %v967_v31 }
 0xcbe   :  { %v2215_v32 = vpop.eup %2214  ;;  %2105 = vmatprep.subr.bf16.mxu0 %v2288_v0 }
 0xcbf   :  { %v2571_v33 = vmul.f32 %v2215_v32, %v2213_v16  ;;  %v1238_v45 = vpop.permute.xlu1 %1237 }
 0xcc1   :  { %v1099_v34 = vpack.c.bf16 %v2571_v33, %v2571_v33 }
 0xcc3   :  { %2102 = vmatmul.mubr.msk.bf16.vlgmr.msra.gmra.mrb[28].mxu1 %vm124_vm2, %v1099_v34 }
 0xcc4   :  { %2112 = vmatpush3.bf16.msra.mxu1 %v2455_v49  ;;  %2113 = vmatprep.mubr.msk.bf16.mxu1 %vm2289_vm0, %v2288_v0 }
 0xcc5   :  { %2128 = vmatprep.subr.bf16.mxu1 %v2288_v0 }
 0xcc6   :  { %v2217_v35 = vpop.eup %2216 }
 0xcc7   :  { %v953_v36 = vsel %vm124_vm2, %v2217_v35, 0.0 }
 0xcc8   :  { %954 = vadd.xlane.f32.xlu0 %v953_v36 }
 0xd55   :  { %v955_v37 = vpop.xlane.xlu0 %954 }
 0xd56   :  { %2218 = vrcp.f32 %v955_v37 }
 0xd60   :  { %v2219_v38 = vpop.eup %2218 }
 0xd61   :  { %v2581_v39 = vmul.f32 %v2219_v38, %v2217_v35 }
 0xd63   :  { %v958_v40 = vpack.c.bf16 %v2581_v39, %v2581_v39 }
 0xd65   :  { %2091 = vmatmul.mubr.msk.bf16.vlgmr.msra.gmra.mrb[20].mxu0 %vm124_vm2, %v958_v40 }
 0xd66   :  { %2106 = vmatpush3.bf16.msra.mxu0 %v2441_v41  ;;  %2107 = vmatprep.mubr.msk.bf16.mxu0 %vm2289_vm0, %v2288_v0  ;;  %v1236_v41 = vpop.permute.xlu1 %1235 }
 0xd67   :  { %2117 = vmatprep.subr.mxu0 %v2288_v0 }
 0xd96   :  { %v1142_v49 = vpop.f32.mrb[28].mxu1 }
 0xd97   :  { %v1148_v42 = vpack.c.bf16 %v1142_v49, %v1142_v49  ;;  %v2103_v43 = vpop.f32.mrb[29].mxu1 }
 0xd98   :  { %v1145_v44 = vpop.f32.mrb[30].mxu1 }
 0xd99   :  { %v2104_v46 = vpop.f32.mrb[31].mxu1  ;;  %2108 = vmatmul.mubr.msk.bf16.vlgmr.msra.gmra.mrb[24].mxu0 %vm124_vm2, %v1148_v42 }
 0xd9a   :  { %2118 = vmatpush3.xpose.msk.msra.mxu0 %vm124_vm2, %v1238_v45  ;;  %2119 = vmatprep.mubr.msk.f32.mxu0 %vm2289_vm0, %v2288_v0 }
 0xd9b   :  { %2122 = vmatprep.subr.bf16.mxu0 %v2288_v0 }
 0xda1   :  { %2120 = vmatmul.mubr.msk.f32.vlgmr.msra.gmra.mrb[28].mxu0 %vm124_vm2, %v1236_v41 }
 0xda2   :  { %2124 = vmatprep.mubr.msk.bf16.mxu0 %vm2289_vm0, %v2288_v0 }
 0xe38   :  { %v1003_v48 = vpop.f32.mrb[20].mxu0 }
 0xe39   :  { %v1009_v50 = vpack.c.bf16 %v1003_v48, %v1003_v48  ;;  %v2092_v8 = vpop.f32.mrb[21].mxu0 }
 0xe3a   :  { %v1006_v52 = vpop.f32.mrb[22].mxu0 }
 0xe3b   :  { %v2093_v53 = vpop.f32.mrb[23].mxu0  ;;  %2114 = vmatmul.mubr.msk.bf16.vlgmr.msra.gmra.mrb[32].mxu1 %vm124_vm2, %v1009_v50 }
 0xe3c   :  { %2129 = vmatpush3.bf16.msra.mxu1 %v2501_v26  ;;  %2130 = vmatprep.mubr.msk.bf16.mxu1 %vm2289_vm0, %v2288_v0 }
 0xe3d   :  { %2139 = vmatprep.subr.bf16.mxu1 %v2288_v0 }
 0xe6c   :  { %v1186_v54 = vpop.f32.mrb[24].mxu0 }
 0xe6d   :  { %v2109_v55 = vpop.f32.mrb[25].mxu0 }
 0xe6e   :  { %v1189_v56 = vpop.f32.mrb[26].mxu0 }
 0xe6f   :  { %v2110_v58 = vpop.f32.mrb[27].mxu0 }
 0xe74   :  { %v1309_v59 = vpop.f32.mrb[28].mxu0 }
 0xe75   :  { %v2121_v60 = vpop.f32.mrb[29].mxu0  ;;  %v1313_v61 = vsel %vm124_vm2, %v1309_v59, -inf }
 0xe76   :  { %1314 = vmax.xlane.f32.xlu1 %v1313_v61 }
 0xf03   :  { %v1315_v62 = vpop.xlane.xlu1 %1314 }
 0xf04   :  { %v1316_v63 = vsub.f32 %v1309_v59, %v1315_v62 }
 0xf06   :  { %v1317_v1 = vmul.f32 1.442695, %v1316_v63 }
 0xf08   :  { %2220 = vpow2.f32 %v1317_v1 }
 0xf0e   :  { %v1229_v2 = vpop.f32.mrb[32].mxu1 }
 0xf0f   :  { %v1230_v26 = vadd.f32 %v1229_v2, %v1186_v54  ;;  %v2115_v5 = vpop.f32.mrb[33].mxu1 }
 0xf10   :  { %v1232_v7 = vpop.f32.mrb[34].mxu1 }
 0xf11   :  { %v2116_v11 = vpop.f32.mrb[35].mxu1 }
 0xf12   :  { %v2221_v12 = vpop.eup %2220 }
 0xf13   :  { %v1319_v13 = vsel %vm124_vm2, %v2221_v12, 0.0 }
 0xf14   :  { %1320 = vadd.xlane.f32.xlu0 %v1319_v13 }
 0xf2a   :  { %1325 = vrot.lane.b32.xlu0 %v2553_v10, %s2296_s14 }
 0xf2e   :  { %1420 = vrot.lane.b32.xlu0 %v2399_v9, %s2297_s15 }
 0xf32   :  { %1418 = vrot.lane.b32.xlu0 %v2399_v9, %s2298_s16 }
 0xfa1   :  { %v1321_v14 = vpop.xlane.xlu0 %1320 }
 0xfa2   :  { %2222 = vrcp.f32 %v1321_v14 }
 0xfa5   :  { %v1326_v15 = vpop.permute.xlu0 %1325 }
 0xfa6   :  { %v1331_v16 = vsel %vm218_vm3, %v1326_v15, 0 }
 0xfa7   :  { %2123 = vmatpush3.bf16.msra.mxu0 %v1331_v16 }
 0xfa8   :  { %2134 = vmatprep.subr.mxu0 %v2288_v0 }
 0xfa9   :  { %v1421_v6 = vpop.permute.xlu0 %1420 }
 0xfac   :  { %v2223_v17 = vpop.eup %2222 }
 0xfad   :  { %v2613_v18 = vmul.f32 %v2223_v17, %v2221_v12  ;;  %v1419_v9 = vpop.permute.xlu0 %1418  ;;  %v2190_v17 = vld [vmem:[#allocation2] sm:$0xff]  }
 0xfaf   :  { %v1324_v19 = vpack.c.bf16 %v2613_v18, %v2613_v18 }
 0xfb1   :  { %2125 = vmatmul.mubr.msk.bf16.vlgmr.msra.gmra.mrb[32].mxu0 %vm124_vm2, %v1324_v19  ;;  %v2191_v19 = vld [vmem:[#allocation2 + $0x8] sm:$0xff]  }
 0xfb2   :  { %2135 = vmatpush3.xpose.msk.msra.mxu0 %vm124_vm2, %v1421_v6  ;;  %2136 = vmatprep.mubr.msk.f32.mxu0 %vm2289_vm0, %v2288_v0  ;;  %v2193_v6 = vld [vmem:[%s2700_s4 + $0x8] sm:$0xff]  }
 0xfb3   :  { %2145 = vmatprep.subr.bf16.mxu0 %v2288_v0 }
 0xfb9   :  { %2137 = vmatmul.mubr.msk.f32.vlgmr.msra.gmra.mrb[30].mxu0 %vm124_vm2, %v1419_v9 }
 0xfba   :  { %2146 = vmatpush3.bf16.msra.mxu0 %v2543_v57  ;;  %2147 = vmatprep.mubr.msk.bf16.mxu0 %vm2289_vm0, %v2288_v0  ;;  %v1933_v57 = vld [vmem:[#allocation4] ss:$0 sm:$0xff] }
 0xfbb   :  { %2159 = vmatprep.subr.bf16.mxu0 %v2288_v0  ;;  %v1605_v32 = vadd.f32 %v1933_v57, %v2567_v20 }
 0xfbd   :  { %v1607_v34 = vadd.f32 %v1605_v32, %v2377_v3 }
 0xfbf   :  { %v1609_v35 = vsel %vm76_vm1, %v1607_v34, 0.0 }
0x1084   :  { %v1367_v22 = vpop.f32.mrb[32].mxu0 }
0x1085   :  { %v1373_v23 = vpack.c.bf16 %v1367_v22, %v1367_v22  ;;  %v2126_v25 = vpop.f32.mrb[33].mxu0 }
0x1086   :  { %v1370_v27 = vpop.f32.mrb[34].mxu0 }
0x1087   :  { %v2127_v28 = vpop.f32.mrb[35].mxu0  ;;  %2131 = vmatmul.mubr.msk.bf16.vlgmr.msra.gmra.mrb[36].mxu1 %vm124_vm2, %v1373_v23 }
0x1088   :  { %2141 = vmatprep.mubr.msk.bf16.mxu1 %vm2289_vm0, %v2288_v0 }
0x108c   :  { %v1492_v29 = vpop.f32.mrb[30].mxu0 }
0x108d   :  { %v2138_v30 = vpop.f32.mrb[31].mxu0  ;;  %v1496_v31 = vsel %vm124_vm2, %v1492_v29, -inf }
0x108e   :  { %1497 = vmax.xlane.f32.xlu1 %v1496_v31  ;;  %v1934_v31 = vld [vmem:[#allocation4 + $0x1] ss:$0 sm:$0xff] }
0x109f   :  { %1508 = vrot.lane.b32.xlu1 %v2553_v10, %s2299_s19 }
0x10c3   :  { %1610 = vadd.xlane.f32.xlu1 %v1609_v35  ;;  %v1935_v35 = vld [vmem:[#allocation4 + $0x2] ss:$0 sm:$0xff] }
0x111b   :  { %v1498_v36 = vpop.xlane.xlu1 %1497 }
0x111c   :  { %v1499_v37 = vsub.f32 %v1492_v29, %v1498_v36 }
0x111e   :  { %v1500_v38 = vmul.f32 1.442695, %v1499_v37 }
0x111f   :  { %v1509_v40 = vpop.permute.xlu1 %1508 }
0x1120   :  { %2224 = vpow2.f32 %v1500_v38  ;;  %v1514_v49 = vsel %vm218_vm3, %v1509_v40, 0 }
0x1121   :  { %2140 = vmatpush3.bf16.msra.mxu1 %v1514_v49  ;;  %v2194_v49 = vld [vmem:[%s2700_s4 + $0x10] sm:$0xff]  }
0x1122   :  { %2151 = vmatprep.subr.bf16.mxu1 %v2288_v0 }
0x112a   :  { %v2225_v42 = vpop.eup %2224 }
0x112b   :  { %v1502_v10 = vsel %vm124_vm2, %v2225_v42, 0.0 }
0x112c   :  { %1503 = vadd.xlane.f32.xlu0 %v1502_v10  ;;  %v1936_v10 = vld [vmem:[#allocation4 + $0x6] ss:$0 sm:$0xff] }
0x1150   :  { %v1611_v56 = vpop.xlane.xlu1 %1610 }
0x1151   :  { %v1616_v58 = vmul.f32 0.03125, %v1611_v56 }
0x1153   :  { %v1618_v63 = vsub.f32 %v1607_v34, %v1616_v58 }
0x1155   :  { %v1620_v7 = vmul.f32 %v1618_v63, %v1618_v63 }
0x1157   :  { %v1622_v11 = vsel %vm76_vm1, %v1620_v7, 0.0 }
0x115a   :  { %v1411_v20 = vpop.f32.mrb[36].mxu1 }
0x115b   :  { %v1417_v43 = vadd.f32 %v1411_v20, %v1230_v26  ;;  %v2132_v3 = vpop.f32.mrb[37].mxu1 }
0x115c   :  { %v1414_v44 = vpop.f32.mrb[38].mxu1 }
0x115d   :  { %v2133_v45 = vpop.f32.mrb[39].mxu1 }
0x11b9   :  { %v1504_v46 = vpop.xlane.xlu0 %1503 }
0x11ba   :  { %2226 = vrcp.f32 %v1504_v46 }
0x11c4   :  { %v2227_v41 = vpop.eup %2226 }
0x11c5   :  { %v2639_v48 = vmul.f32 %v2227_v41, %v2225_v42  ;;  %v2195_v42 = vld [vmem:[%s2700_s4 + $0x18] sm:$0xff]  }
0x11c7   :  { %v1507_v50 = vpack.c.bf16 %v2639_v48, %v2639_v48 }
0x11c9   :  { %2142 = vmatmul.mubr.msk.bf16.vlgmr.msra.gmra.mrb[40].mxu1 %vm124_vm2, %v1507_v50 }
0x11ca   :  { %2155 = vmatprep.mubr.msk.bf16.mxu1 %vm2289_vm0, %v2288_v0  ;;  %2152 = vmatpush3.bf16.msra.mxu1 %v2190_v17 }
0x11cb   :  { %2153 = vmatprep.subr.bf16.mxu1 %v2288_v0 }
0x11ce   :  { %2154 = vmatpush3.bf16.msra.mxu1 %v2191_v19 }
0x129c   :  { %v1550_v8 = vpop.f32.mrb[40].mxu1 }
0x129d   :  { %v1556_v52 = vpack.c.bf16 %v1550_v8, %v1550_v8  ;;  %v2143_v53 = vpop.f32.mrb[41].mxu1 }
0x129e   :  { %v1553_v54 = vpop.f32.mrb[42].mxu1 }
0x129f   :  { %v2144_v55 = vpop.f32.mrb[43].mxu1  ;;  %2148 = vmatmul.mubr.msk.bf16.vlgmr.msra.gmra.mrb[36].mxu0 %vm124_vm2, %v1556_v52  ;;  %v1940_v52 = vld [vmem:[#allocation4 + $0x3] ss:$0 sm:$0xff] }
0x12a0   :  { %2167 = vmatprep.mubr.msk.bf16.mxu0 %vm2289_vm0, %v2288_v0 }
0x1372   :  { %v1594_v59 = vpop.f32.mrb[36].mxu0 }
0x1373   :  { %v1600_v60 = vadd.f32 %v1594_v59, %v1417_v43  ;;  %v2149_v61 = vpop.f32.mrb[37].mxu0 }
0x1374   :  { %v1597_v62 = vpop.f32.mrb[38].mxu0 }
0x1375   :  { %v1606_v1 = vadd.f32 %v1933_v57, %v1600_v60  ;;  %v2150_v2 = vpop.f32.mrb[39].mxu0 }
0x1377   :  { %v1608_v26 = vadd.f32 %v1606_v1, %v2382_v4  ;;  %v2192_v4 = vld [vmem:[%s2700_s4] sm:$0xff]   ;;  %s2300_s4 = smov 32  }
0x1378   :  { %2160 = vmatpush3.bf16.msra.mxu0 %v2192_v4 }
0x1379   :  { %v1612_v5 = vsel %vm76_vm1, %v1608_v26, 0.0  ;;  %2161 = vmatprep.subr.bf16.mxu0 %v2288_v0 }
0x137a   :  { %1613 = vadd.xlane.f32.xlu0 %v1612_v5 }
0x137c   :  { %2162 = vmatpush3.bf16.msra.mxu0 %v2193_v6 }
0x137d   :  { %2163 = vmatprep.subr.bf16.mxu0 %v2288_v0 }
0x137e   :  { %1623 = vadd.xlane.f32.xlu0 %v1622_v11 }
0x1380   :  { %2164 = vmatpush3.bf16.msra.mxu0 %v2194_v49 }
0x1381   :  { %2165 = vmatprep.subr.bf16.mxu0 %v2288_v0 }
0x1384   :  { %2166 = vmatpush3.bf16.msra.mxu0 %v2195_v42 }
0x1407   :  { %v1614_v12 = vpop.xlane.xlu0 %1613 }
0x1408   :  { %v1617_v13 = vmul.f32 0.03125, %v1614_v12 }
0x140a   :  { %v1619_v14 = vsub.f32 %v1608_v26, %v1617_v13 }
0x140b   :  { %v1624_v9 = vpop.xlane.xlu0 %1623 }
0x140c   :  { %v1621_v15 = vmul.f32 %v1619_v14, %v1619_v14  ;;  %v1628_v22 = vmul.f32 0.03125, %v1624_v9 }
0x140e   :  { %v1625_v16 = vsel %vm76_vm1, %v1621_v15, 0.0  ;;  %v1630_v23 = vadd.f32 1e-05, %v1628_v22  ;;  %v1946_v22 = vld [vmem:[#allocation4 + $0x4] ss:$0 sm:$0xff] }
0x140f   :  { %1626 = vadd.xlane.f32.xlu0 %v1625_v16 }
0x1410   :  { %2228 = vrsqrt.f32 %v1630_v23  ;;  %v1947_v23 = vld [vmem:[#allocation4 + $0x5] ss:$0 sm:$0xff] }
0x141a   :  { %v2229_v29 = vpop.eup %2228 }
0x141b   :  { %v1634_v30 = vmul.f32 %v2229_v29, %v1618_v63 }
0x141d   :  { %v1640_v32 = vmul.f32 %v1934_v31, %v1634_v30 }
0x141f   :  { %v1646_v37 = vadd.f32 %v1935_v35, %v1640_v32 }
0x149c   :  { %v1627_v25 = vpop.xlane.xlu0 %1626 }
0x149d   :  { %v1629_v27 = vmul.f32 0.03125, %v1627_v25 }
0x149f   :  { %v1631_v28 = vadd.f32 1e-05, %v1629_v27 }
0x14a1   :  { %2230 = vrsqrt.f32 %v1631_v28 }
0x14ab   :  { %v2231_v57 = vpop.eup %2230 }
0x14ac   :  { %v1635_v34 = vmul.f32 %v2231_v57, %v1619_v14 }
0x14ae   :  { %v1641_v36 = vmul.f32 %v1934_v31, %v1635_v34 }
0x14b0   :  { %v1647_v38 = vadd.f32 %v1935_v35, %v1641_v36 }
0x14b2   :  { %v1648_v40 = vpack.c.bf16 %v1647_v38, %v1646_v37 }
0x14b4   :  { %2156 = vmatmul.mubr.msk.bf16.vlgmr.msra.gmra.mrb[44].mxu1 %vm76_vm1, %v1648_v40 }
0x1587   :  { %v1706_v20 = vpop.f32.mrb[44].mxu1 }
0x1588   :  { %v1707_v43 = vadd.f32 %v1936_v10, %v1706_v20  ;;  %v2157_v3 = vpop.f32.mrb[45].mxu1 }
0x1589   :  { %v1709_v44 = vpop.f32.mrb[46].mxu1 }
0x158a   :  { %v1710_v45 = vadd.f32 %v1936_v10, %v1709_v44  ;;  %v2158_v46 = vpop.f32.mrb[47].mxu1  ;;  %v1713_v41 = vmax.f32 %v1707_v43, 0.0 }
0x158c   :  { %v1714_v50 = vmax.f32 %v1710_v45, 0.0 }
0x158e   :  { %v1715_v8 = vpack.c.bf16 %v1714_v50, %v1713_v41 }
0x1590   :  { %2168 = vmatmul.mubr.msk.bf16.vlgmr.msra.gmra.mrb[40].mxu0 %vm1752_vm4, %v1715_v8 }
0x1663   :  { %v1790_v0 = vpop.f32.mrb[40].mxu0 }
0x1664   :  { %v1791_v53 = vadd.f32 %v1940_v52, %v1790_v0  ;;  %v2169_v54 = vpop.f32.mrb[41].mxu0 }
0x1665   :  { %v1793_v55 = vpop.f32.mrb[42].mxu0 }
0x1666   :  { %v1794_v56 = vadd.f32 %v1940_v52, %v1793_v55  ;;  %v2170_v58 = vpop.f32.mrb[43].mxu0  ;;  %v1797_v59 = vmax.f32 %v1791_v53, 0.0 }
0x1668   :  { %v1798_v60 = vmax.f32 %v1794_v56, 0.0  ;;  %v1799_v63 = vadd.f32 %v1797_v59, %v1646_v37 }
0x166a   :  { %v1800_v61 = vadd.f32 %v1798_v60, %v1647_v38  ;;  %v1801_v1 = vsel %vm76_vm1, %v1799_v63, 0.0 }
0x166c   :  { %v1804_v62 = vsel %vm76_vm1, %v1800_v61, 0.0 }
0x166d   :  { %1805 = vadd.xlane.f32.xlu0 %v1804_v62 }
0x1671   :  { %1802 = vadd.xlane.f32.xlu0 %v1801_v1 }
0x16fa   :  { %v1806_v2 = vpop.xlane.xlu0 %1805 }
0x16fb   :  { %v1808_v26 = vmul.f32 0.03125, %v1806_v2 }
0x16fd   :  { %v1810_v5 = vsub.f32 %v1800_v61, %v1808_v26 }
0x16fe   :  { %v1803_v7 = vpop.xlane.xlu0 %1802 }
0x16ff   :  { %v1807_v11 = vmul.f32 0.03125, %v1803_v7  ;;  %v1812_v12 = vmul.f32 %v1810_v5, %v1810_v5 }
0x1701   :  { %v1809_v13 = vsub.f32 %v1799_v63, %v1807_v11  ;;  %v1816_v14 = vsel %vm76_vm1, %v1812_v12, 0.0 }
0x1702   :  { %1817 = vadd.xlane.f32.xlu0 %v1816_v14 }
0x1703   :  { %v1811_v15 = vmul.f32 %v1809_v13, %v1809_v13 }
0x1705   :  { %v1813_v16 = vsel %vm76_vm1, %v1811_v15, 0.0 }
0x1706   :  { %1814 = vadd.xlane.f32.xlu1 %v1813_v16 }
0x1717   :  { %1844 = vrot.lane.b32.xlu1 %v2417_v24, %s2285_s7 }
0x1718   :  { %1852 = vrot.lane.b32.xlu0 %v2485_v21, %s2294_s8 }
0x171b   :  { %1848 = vrot.lane.b32.xlu1 %v2450_v47, %s2297_s15 }
0x171f   :  { %1856 = vrot.lane.b32.xlu1 %v2521_v51, %s2291_s0 }
0x1723   :  { %1864 = vrot.lane.b32.xlu1 %v2571_v33, %s2298_s16 }
0x1727   :  { %1872 = vrot.lane.b32.xlu1 %v2639_v48, %s2292_s29 }
0x178f   :  { %v1818_v17 = vpop.xlane.xlu0 %1817 }
0x1790   :  { %v1820_v19 = vmul.f32 0.03125, %v1818_v17 }
0x1792   :  { %v1822_v4 = vadd.f32 1e-05, %v1820_v19 }
0x1793   :  { %v1815_v6 = vpop.xlane.xlu1 %1814  ;;  %v1853_v31 = vpop.permute.xlu0 %1852 }
0x1794   :  { %2232 = vrsqrt.f32 %v1822_v4  ;;  %v1819_v24 = vmul.f32 0.03125, %v1815_v6 }
0x1796   :  { %v1821_v9 = vadd.f32 1e-05, %v1819_v24 }
0x1797   :  { %v1845_v29 = vpop.permute.xlu1 %1844 }
0x1798   :  { %2234 = vrsqrt.f32 %v1821_v9 }
0x179b   :  { %v1849_v30 = vpop.permute.xlu1 %1848 }
0x179e   :  { %v2233_v21 = vpop.eup %2232 }
0x179f   :  { %v1826_v47 = vmul.f32 %v2233_v21, %v1810_v5  ;;  %v1857_v57 = vpop.permute.xlu1 %1856 }
0x17a1   :  { %v1832_v25 = vmul.f32 %v1946_v22, %v1826_v47 }
0x17a2   :  { %v2235_v51 = vpop.eup %2234 }
0x17a3   :  { %v1825_v27 = vmul.f32 %v2235_v51, %v1809_v13  ;;  %v1838_v28 = vadd.f32 %v1947_v23, %v1832_v25  ;;  %v1865_v36 = vpop.permute.xlu1 %1864 }
0x17a5   :  { %v1831_v33 = vmul.f32 %v1946_v22, %v1825_v27  ;;  %1840 = vrot.lane.b32.xlu0 %v1838_v28, %s2300_s4 }
0x17a7   :  { %v1837_v48 = vadd.f32 %v1947_v23, %v1831_v33  ;;  %v1873_v10 = vpop.permute.xlu1 %1872 }
0x17a9   :  { %1860 = vrot.lane.b32.xlu0 %v2581_v39, %s2290_s1 }
0x17ad   :  { %1868 = vrot.lane.b32.xlu0 %v2613_v18, %s2295_s9 }
0x1817   :  { %v1841_v32 = vpop.permute.xlu0 %1840 }
0x1818   :  { %v1875_v34 = vsel %vm76_vm1, %v1837_v48, %v1841_v32 }
0x1819   :  { %v1876_v35 = vsel %vm1752_vm4, %v1875_v34, %v1845_v29 }
0x181a   :  { %v1878_v37 = vsel %vm1877_vm5, %v1876_v35, %v1849_v30 }
0x181b   :  { %v1880_v38 = vsel %vm1879_vm6, %v1878_v37, %v1853_v31  ;;  %v1861_v39 = vpop.permute.xlu0 %1860 }
0x181c   :  { %v1882_v40 = vsel %vm1881_vm7, %v1880_v38, %v1857_v57 }
0x181d   :  { %v1884_v18 = vsel %vm1883_vm8, %v1882_v40, %v1861_v39 }
0x181e   :  { %v1886_v49 = vsel %vm1885_vm9, %v1884_v18, %v1865_v36 }
0x181f   :  { %v1869_v42 = vpop.permute.xlu0 %1868 }
0x1820   :  { %v1888_v20 = vsel %vm1887_vm10, %v1886_v49, %v1869_v42 }
0x1821   :  { %v1890_v43 = vsel %vm1889_vm11, %v1888_v20, %v1873_v10 }
0x1822   :  { %1891 = vst [vmem:[%s2702_s6] sm:$0xff] %v1890_v43 }
0x1823   :  { %1896 = vsyncpa [#allocation3], 1 }
0x1824   :  { %1897 = vsyncpa [#allocation5], 1 }

</bundles_post_ra>
